<compile_context>
chip_gen: v5e
topology: v5e:2x2
jax: 0.10.0
libtpu: 0.0.40
codegen_flags: <defaults>
</compile_context>

<pallas_src>
import functools
import math

import jax
import jax.numpy as jnp
from jax.experimental import pallas as pl
from jax.experimental.pallas import tpu as pltpu

IN_DIM, H1, H2, OUT_DIM = 28 * 28, 300, 100, 10
H1P, H2P, OUTP = 384, 128, 128      # lane-padded widths (multiples of 128)
GROUP_B = 8                         # rows per softmax group (one forward() batch)
TARGET_ROWS = 1024                  # target MXU M rows per grid step


def mlp_softmax_kernel(x_ref, w1_ref, b1_ref, w2_ref, b2_ref, w3_ref, b3_ref,
                       o_ref, *, group_b):
    # x_ref: (rows, 784) bf16 -- many groups stacked so the matmuls run with a
    # large M instead of M=8.  Weights are bf16, biases f32, accumulation f32.
    x = x_ref[...]
    h1 = jnp.dot(x, w1_ref[...], preferred_element_type=jnp.float32)
    h1 = jnp.maximum(h1 + b1_ref[...], 0.0)                       # (rows, 384) f32
    h2 = jnp.dot(h1.astype(jnp.bfloat16), w2_ref[...],
                 preferred_element_type=jnp.float32)
    h2 = jnp.maximum(h2 + b2_ref[...], 0.0)                       # (rows, 128) f32
    logits = jnp.dot(h2.astype(jnp.bfloat16), w3_ref[...],
                     preferred_element_type=jnp.float32)
    logits = logits + b3_ref[...]                                 # (rows, 128) f32

    # torch.nn.functional.softmax(..., dim=0): normalize across the batch rows
    # of each group.  Groups are 8-sublane aligned, so this reshape is free.
    rows = logits.shape[0]
    lg = logits.reshape(rows // group_b, group_b, OUTP)
    mx = jnp.max(lg, axis=1, keepdims=True)
    e = jnp.exp(lg - mx)
    s = jnp.sum(e, axis=1, keepdims=True)
    inv_s = pl.reciprocal(s, approx=False)                        # EUP, not VPU divide
    o_ref[...] = (e * inv_s).reshape(rows, OUTP)


def _pad2(a, shape):
    out = jnp.zeros(shape, a.dtype)
    return out.at[: a.shape[0], : a.shape[1]].set(a)


def prepare_params(params):
    """Pad weights to 128-lane multiples and cast them to bf16 ONCE."""
    w1, b1, w2, b2, w3, b3 = params
    w1p = _pad2(w1, (IN_DIM, H1P)).astype(jnp.bfloat16)
    w2p = _pad2(w2, (H1P, H2P)).astype(jnp.bfloat16)
    w3p = _pad2(w3, (H2P, OUTP)).astype(jnp.bfloat16)
    b1p = _pad2(b1, (1, H1P))
    b2p = _pad2(b2, (1, H2P))
    b3p = _pad2(b3, (1, OUTP))
    return (w1p, b1p, w2p, b2p, w3p, b3p)


def _choose_groups_per_step(G, B):
    """Pick groups-per-step: big tiles, >=2 balanced steps, bf16-aligned rows."""
    if B % 8 != 0:
        return G                      # single full block (sublane dim = full dim)
    target_gps = max(TARGET_ROWS // B, 1)
    num_steps = pl.cdiv(G, target_gps)
    if G >= 2:
        num_steps = max(num_steps, 2)  # keep both v7x TensorCores busy
    gps = pl.cdiv(G, num_steps)
    # bf16 x blocks: keep rows (= gps*B) a multiple of 16 so every block's
    # sublane offset/extent is packing-aligned.
    mult = 16 // math.gcd(B, 16)
    gps = pl.cdiv(gps, mult) * mult
    return gps


def model_forward(x, prepared_params):
    """x: (G, B, 784) or (B, 784) -> (G, B, 10) / (B, 10).  Each group g is one
    Model.forward(x_g) call (softmax over dim=0 of that batch)."""
    w1p, b1p, w2p, b2p, w3p, b3p = prepared_params
    squeeze = x.ndim == 2
    if squeeze:
        x = x[None]
    G, B, _ = x.shape

    gps = _choose_groups_per_step(G, B)
    rows = gps * B
    grid = pl.cdiv(G, gps)            # last block may be ragged; no concat/pad of x

    xf = x.reshape(G * B, IN_DIM).astype(jnp.bfloat16)

    const = lambda shape: pl.BlockSpec(shape, lambda g: (0,) * len(shape))

    out = pl.pallas_call(
        functools.partial(mlp_softmax_kernel, group_b=B),
        out_shape=jax.ShapeDtypeStruct((G * B, OUTP), jnp.float32),
        grid=(grid,),
        in_specs=[
            pl.BlockSpec((rows, IN_DIM), lambda g: (g, 0)),   # x tile per step
            const((IN_DIM, H1P)), const((1, H1P)),            # weights resident
            const((H1P, H2P)), const((1, H2P)),
            const((H2P, OUTP)), const((1, OUTP)),
        ],
        out_specs=pl.BlockSpec((rows, OUTP), lambda g: (g, 0)),
        compiler_params=pltpu.CompilerParams(
            dimension_semantics=("parallel",)),   # split groups across TCs
    )(xf, w1p, b1p, w2p, b2p, w3p, b3p)

    out = out.reshape(G, B, OUTP)[:, :, :OUT_DIM]
    return out[0] if squeeze else out


def init_params(key):
    # Mirrors Model.init_weights: weights ~ U(-1/28, 1/28), biases = 0.
    k1, k2, k3 = jax.random.split(key, 3)
    lim = 1.0 / 28.0
    w1 = jax.random.uniform(k1, (IN_DIM, H1), jnp.float32, -lim, lim)
    w2 = jax.random.uniform(k2, (H1, H2), jnp.float32, -lim, lim)
    w3 = jax.random.uniform(k3, (H2, OUT_DIM), jnp.float32, -lim, lim)
    b1 = jnp.zeros((1, H1), jnp.float32)
    b2 = jnp.zeros((1, H2), jnp.float32)
    b3 = jnp.zeros((1, OUT_DIM), jnp.float32)
    return w1, b1, w2, b2, w3, b3


def reference_forward(x, params):
    """Pure-JAX reference with the same bf16-operand / f32-accumulate path."""
    w1, b1, w2, b2, w3, b3 = params
    xb = x.astype(jnp.bfloat16)
    w1b, w2b, w3b = (w.astype(jnp.bfloat16) for w in (w1, w2, w3))
    h1 = jnp.maximum(jnp.dot(xb, w1b, preferred_element_type=jnp.float32) + b1, 0.0)
    h2 = jnp.maximum(jnp.dot(h1.astype(jnp.bfloat16), w2b,
                             preferred_element_type=jnp.float32) + b2, 0.0)
    logits = jnp.dot(h2.astype(jnp.bfloat16), w3b,
                     preferred_element_type=jnp.float32) + b3
    return jax.nn.softmax(logits, axis=-2)   # dim=0 of each group's batch


if __name__ == "__main__":
    key = jax.random.PRNGKey(0)
    kx, kp = jax.random.split(key)
    params = init_params(kp)
    prepared = prepare_params(params)        # pad + bf16-cast weights ONCE

    # Case 1: a single batch of 8 — the literal Model.forward(x) call.
    x1 = jax.random.normal(kx, (GROUP_B, IN_DIM), jnp.float32)
    out1 = jax.block_until_ready(model_forward(x1, prepared))
    ref1 = reference_forward(x1, params)
    assert out1.shape == (GROUP_B, OUT_DIM)
    assert bool(jnp.allclose(out1, ref1, atol=1e-3)), \
        float(jnp.max(jnp.abs(out1 - ref1)))
    # softmax over dim=0: every output column sums to 1 over the batch
    assert bool(jnp.allclose(jnp.sum(out1, axis=0), jnp.ones(OUT_DIM), atol=1e-3))

    # Case 2: many independent forward() batches fused into one pallas_call.
    # G=41 gives a 2-step grid (megacore-balanced) with a ragged last block,
    # exercising the no-concatenate path: OOB writes of the padded groups are
    # discarded by Pallas and never touch real groups.
    G = 41
    xg = jax.random.normal(kx, (G, GROUP_B, IN_DIM), jnp.float32)
    outg = jax.block_until_ready(model_forward(xg, prepared))
    refg = reference_forward(xg, params)
    assert outg.shape == (G, GROUP_B, OUT_DIM)
    assert bool(jnp.allclose(outg, refg, atol=1e-3)), \
        float(jnp.max(jnp.abs(outg - refg)))

    # TODO(synk): loss_primal/loss_dual/clamp_dual (ngram-indexed dual
    # variables) are training-time scalar loops, not part of forward(); not
    # ported to Pallas.
    print("KERNEL_OK")
</pallas_src>

<mosaic_0001>
module attributes {stable_mosaic.version = 11 : i64} {
  func.func @mlp_softmax_kernel(%arg0: i32, %arg1: memref<16x784xbf16, #tpu.memory_space<vmem>>, %arg2: memref<784x384xbf16, #tpu.memory_space<vmem>>, %arg3: memref<1x384xf32, #tpu.memory_space<vmem>>, %arg4: memref<384x128xbf16, #tpu.memory_space<vmem>>, %arg5: memref<1x128xf32, #tpu.memory_space<vmem>>, %arg6: memref<128x128xbf16, #tpu.memory_space<vmem>>, %arg7: memref<1x128xf32, #tpu.memory_space<vmem>>, %arg8: memref<16x128xf32, #tpu.memory_space<vmem>>) attributes {dimension_semantics = [#tpu.dimension_semantics<parallel>], iteration_bounds = array<i64: 1>, scalar_prefetch = 0 : i64, scratch_operands = 0 : i64, tpu.core_type = #tpu.core_type<tc>, window_params = [{transform_indices = @transform_0, window_bounds = array<i64: 16, 784>}, {pipeline_mode = #tpu.pipeline_mode<synchronous>, transform_indices = @transform_1, window_bounds = array<i64: 784, 384>}, {pipeline_mode = #tpu.pipeline_mode<synchronous>, transform_indices = @transform_2, window_bounds = array<i64: 1, 384>}, {pipeline_mode = #tpu.pipeline_mode<synchronous>, transform_indices = @transform_3, window_bounds = array<i64: 384, 128>}, {pipeline_mode = #tpu.pipeline_mode<synchronous>, transform_indices = @transform_4, window_bounds = array<i64: 1, 128>}, {pipeline_mode = #tpu.pipeline_mode<synchronous>, transform_indices = @transform_5, window_bounds = array<i64: 128, 128>}, {pipeline_mode = #tpu.pipeline_mode<synchronous>, transform_indices = @transform_6, window_bounds = array<i64: 1, 128>}, {transform_indices = @transform_7, window_bounds = array<i64: 16, 128>}]} {
    %c0 = arith.constant 0 : index
    %c0_0 = arith.constant 0 : index
    %0 = vector.load %arg1[%c0, %c0_0] : memref<16x784xbf16, #tpu.memory_space<vmem>>, vector<16x784xbf16>
    %c0_1 = arith.constant 0 : index
    %c0_2 = arith.constant 0 : index
    %1 = vector.load %arg2[%c0_1, %c0_2] : memref<784x384xbf16, #tpu.memory_space<vmem>>, vector<784x384xbf16>
    %cst = arith.constant dense<0.000000e+00> : vector<16x384xf32>
    %2 = tpu.matmul %0, %1, %cst {dimension_numbers = #tpu.dot_dimension_numbers<[1], [0], [0], [1], [0, 0, 1, 1], [], []>} : vector<16x784xbf16>, vector<784x384xbf16>, vector<16x384xf32> -> vector<16x384xf32>
    %c0_3 = arith.constant 0 : index
    %c0_4 = arith.constant 0 : index
    %3 = vector.load %arg3[%c0_3, %c0_4] : memref<1x384xf32, #tpu.memory_space<vmem>>, vector<1x384xf32>
    %4 = vector.broadcast %3 : vector<1x384xf32> to vector<16x384xf32>
    %5 = arith.addf %2, %4 : vector<16x384xf32>
    %cst_5 = arith.constant 0.000000e+00 : f32
    %6 = vector.broadcast %cst_5 : f32 to vector<16x384xf32>
    %7 = arith.maximumf %5, %6 : vector<16x384xf32>
    %8 = arith.truncf %7 : vector<16x384xf32> to vector<16x384xbf16>
    %c0_6 = arith.constant 0 : index
    %c0_7 = arith.constant 0 : index
    %9 = vector.load %arg4[%c0_6, %c0_7] : memref<384x128xbf16, #tpu.memory_space<vmem>>, vector<384x128xbf16>
    %cst_8 = arith.constant dense<0.000000e+00> : vector<16x128xf32>
    %10 = tpu.matmul %8, %9, %cst_8 {dimension_numbers = #tpu.dot_dimension_numbers<[1], [0], [0], [1], [0, 0, 1, 1], [], []>} : vector<16x384xbf16>, vector<384x128xbf16>, vector<16x128xf32> -> vector<16x128xf32>
    %c0_9 = arith.constant 0 : index
    %c0_10 = arith.constant 0 : index
    %11 = vector.load %arg5[%c0_9, %c0_10] : memref<1x128xf32, #tpu.memory_space<vmem>>, vector<1x128xf32>
    %12 = vector.broadcast %11 : vector<1x128xf32> to vector<16x128xf32>
    %13 = arith.addf %10, %12 : vector<16x128xf32>
    %cst_11 = arith.constant 0.000000e+00 : f32
    %14 = vector.broadcast %cst_11 : f32 to vector<16x128xf32>
    %15 = arith.maximumf %13, %14 : vector<16x128xf32>
    %16 = arith.truncf %15 : vector<16x128xf32> to vector<16x128xbf16>
    %c0_12 = arith.constant 0 : index
    %c0_13 = arith.constant 0 : index
    %17 = vector.load %arg6[%c0_12, %c0_13] : memref<128x128xbf16, #tpu.memory_space<vmem>>, vector<128x128xbf16>
    %cst_14 = arith.constant dense<0.000000e+00> : vector<16x128xf32>
    %18 = tpu.matmul %16, %17, %cst_14 {dimension_numbers = #tpu.dot_dimension_numbers<[1], [0], [0], [1], [0, 0, 1, 1], [], []>} : vector<16x128xbf16>, vector<128x128xbf16>, vector<16x128xf32> -> vector<16x128xf32>
    %c0_15 = arith.constant 0 : index
    %c0_16 = arith.constant 0 : index
    %19 = vector.load %arg7[%c0_15, %c0_16] : memref<1x128xf32, #tpu.memory_space<vmem>>, vector<1x128xf32>
    %20 = vector.broadcast %19 : vector<1x128xf32> to vector<16x128xf32>
    %21 = arith.addf %18, %20 : vector<16x128xf32>
    %22 = vector.shape_cast %21 : vector<16x128xf32> to vector<2x8x128xf32>
    %cst_17 = arith.constant dense<0xFF800000> : vector<2x128xf32>
    %23 = vector.multi_reduction <maximumf>, %22, %cst_17 [1] : vector<2x8x128xf32> to vector<2x128xf32>
    %24 = vector.shape_cast %23 : vector<2x128xf32> to vector<2x1x128xf32>
    %25 = vector.broadcast %24 : vector<2x1x128xf32> to vector<2x8x128xf32>
    %26 = arith.subf %22, %25 : vector<2x8x128xf32>
    %27 = math.exp %26 : vector<2x8x128xf32>
    %cst_18 = arith.constant dense<0.000000e+00> : vector<2x128xf32>
    %28 = vector.multi_reduction <add>, %27, %cst_18 [1] : vector<2x8x128xf32> to vector<2x128xf32>
    %29 = vector.shape_cast %28 : vector<2x128xf32> to vector<2x1x128xf32>
    %30 = tpu.reciprocal %29 : vector<2x1x128xf32> -> vector<2x1x128xf32>
    %31 = vector.broadcast %30 : vector<2x1x128xf32> to vector<2x8x128xf32>
    %32 = arith.mulf %27, %31 : vector<2x8x128xf32>
    %33 = vector.shape_cast %32 : vector<2x8x128xf32> to vector<16x128xf32>
    %c0_19 = arith.constant 0 : index
    %c0_20 = arith.constant 0 : index
    %34 = vector.load %arg8[%c0_19, %c0_20] : memref<16x128xf32, #tpu.memory_space<vmem>>, vector<16x128xf32>
    tpu.vector_store %arg8[%c0_19, %c0_20], %33 {strides = array<i32>} : memref<16x128xf32, #tpu.memory_space<vmem>>, vector<16x128xf32>,
    return
  }
  func.func @transform_0(%arg0: i32) -> (i32, i32) {
    %c0_i32 = arith.constant 0 : i32
    %c0_i32_0 = arith.constant 0 : i32
    return %arg0, %c0_i32 : i32, i32
  }
  func.func @transform_1(%arg0: i32) -> (i32, i32) {
    %c0_i32 = arith.constant 0 : i32
    %c0_i32_0 = arith.constant 0 : i32
    %c0_i32_1 = arith.constant 0 : i32
    return %c0_i32, %c0_i32_0 : i32, i32
  }
  func.func @transform_2(%arg0: i32) -> (i32, i32) {
    %c0_i32 = arith.constant 0 : i32
    %c0_i32_0 = arith.constant 0 : i32
    %c0_i32_1 = arith.constant 0 : i32
    return %c0_i32, %c0_i32_0 : i32, i32
  }
  func.func @transform_3(%arg0: i32) -> (i32, i32) {
    %c0_i32 = arith.constant 0 : i32
    %c0_i32_0 = arith.constant 0 : i32
    %c0_i32_1 = arith.constant 0 : i32
    return %c0_i32, %c0_i32_0 : i32, i32
  }
  func.func @transform_4(%arg0: i32) -> (i32, i32) {
    %c0_i32 = arith.constant 0 : i32
    %c0_i32_0 = arith.constant 0 : i32
    %c0_i32_1 = arith.constant 0 : i32
    return %c0_i32, %c0_i32_0 : i32, i32
  }
  func.func @transform_5(%arg0: i32) -> (i32, i32) {
    %c0_i32 = arith.constant 0 : i32
    %c0_i32_0 = arith.constant 0 : i32
    %c0_i32_1 = arith.constant 0 : i32
    return %c0_i32, %c0_i32_0 : i32, i32
  }
  func.func @transform_6(%arg0: i32) -> (i32, i32) {
    %c0_i32 = arith.constant 0 : i32
    %c0_i32_0 = arith.constant 0 : i32
    %c0_i32_1 = arith.constant 0 : i32
    return %c0_i32, %c0_i32_0 : i32, i32
  }
  func.func @transform_7(%arg0: i32) -> (i32, i32) {
    %c0_i32 = arith.constant 0 : i32
    %c0_i32_0 = arith.constant 0 : i32
    return %arg0, %c0_i32 : i32, i32
  }
}

</mosaic_0001>

<bundles_post_ra>
// kernel: tpu_custom_call.1
= control target key start
LH: loop header
LB: loop body
LE: loop exit
PB: predicated region body
PF: predicated region fallthrough
CT: control target
= control target key end

     0   :  { %12 = vsyncpa [#allocation3], 0  ;;  %s3078_s0 = inlined_call_operand.hbm [shape: bf16[8,784], index: 0, kind: input, shape index: {}]   ;;  %s3079_s1 = inlined_call_operand.hbm [shape: bf16[784,384], index: 1, kind: input, shape index: {}]   ;;  %s3080_s2 = inlined_call_operand.hbm [shape: f32[1,384], index: 2, kind: input, shape index: {}]   ;;  %s3081_s3 = inlined_call_operand.hbm [shape: bf16[384,128], index: 3, kind: input, shape index: {}]   ;;  %s3082_s4 = inlined_call_operand.vmem [shape: f32[1,128], index: 4, kind: input, shape index: {}]   ;;  %s3083_s5 = inlined_call_operand.hbm [shape: bf16[128,128], index: 5, kind: input, shape index: {}]   ;;  %s3084_s6 = inlined_call_operand.vmem [shape: f32[1,128], index: 6, kind: input, shape index: {}]   ;;  %s3085_s7 = inlined_call_operand.hbm [shape: f32[8,128], index: 7, kind: output, shape index: {}]  }
   0x1   :  { %13 = vsyncpa [#allocation6], 0 }
   0x2   :  { %14 = vsyncpa [#allocation9], 0 }
   0x3   :  { %15 = vsyncpa [#allocation4], 0  ;;  %s33_s26 = sshll.u32 %s3079_s1, 4  ;;  %s34_s26 = int_to_ptr.hbm [resolvable:$true] %s33_s26 }
   0x4   :  { %19 = vsyncadd [#allocation3], 448  ;;  %s2957_s27 = smov [#allocation5]   ;;  %s57_s8 = sshll.u32 %s3081_s3, 4  ;;  %s58_s8 = int_to_ptr.hbm [resolvable:$true] %s57_s8 }
   0x5   :  { %s35_s28 = sshll.u32 %s2957_s27, 4  ;;  %s2958_s9 = smov 192   ;;  %s36_s28 = int_to_ptr.vmem [resolvable:$true] %s35_s28 }
   0x6   :  { %s2959_s10 = smov 12   ;;  %s2960_s11 = smov [#allocation8]  }
   0x7   :  { %41 = dma.hbm_to_vmem [thread:$0]  %s34_s26, 18816, %s36_s28, [#allocation6], %s2958_s9, %s2958_s9, %s2959_s10  }
   0x8   :  { %s59_s12 = sshll.u32 %s2960_s11, 4  ;;  %s2961_s13 = smov 64   ;;  %s60_s12 = int_to_ptr.vmem [resolvable:$true] %s59_s12 }
   0x9   :  { %s2962_s14 = smov 4   ;;  %s20_s16 = sshll.u32 %s3078_s0, 4  ;;  %s21_s16 = int_to_ptr.hbm [resolvable:$true] %s20_s16 }
   0xa   :  { %65 = dma.hbm_to_vmem [thread:$0]  %s58_s8, 3072, %s60_s12, [#allocation9], %s2961_s13, %s2961_s13, %s2962_s14  }
   0xb   :  { %s2963_s17 = smov [#allocation2]   ;;  %s47_s20 = sshll.u32 %s3080_s2, 4  ;;  %s48_s20 = int_to_ptr.hbm [resolvable:$true] %s47_s20 }
   0xc   :  { %s22_s18 = sshll.u32 %s2963_s17, 4  ;;  %s2964_s21 = smov 448   ;;  %s23_s18 = int_to_ptr.vmem [resolvable:$true] %s22_s18 }
   0xd   :  { %s2965_s22 = smov 28   ;;  %s2966_s23 = smov [#allocation7]  }
   0xe   :  { %28 = dma.hbm_to_vmem [thread:$0]  %s21_s16, 448, %s23_s18, [#allocation3], %s2964_s21, %s2964_s21, %s2965_s22  }
   0xf   :  { %s49_s24 = sshll.u32 %s2966_s23, 4  ;;  %s72_s27 = sshll.u32 %s3083_s5, 4  ;;  %s50_s24 = int_to_ptr.vmem [resolvable:$true] %s49_s24  ;;  %s73_s27 = int_to_ptr.hbm [resolvable:$true] %s72_s27 }
  0x10   :  { %52 = dma.hbm_to_vmem [thread:$0]  %s48_s20, 48, %s50_s24, [#allocation6]  }
  0x11   :  { %s2967_s0 = smov [#allocation10]  }
  0x12   :  { %s74_s28 = sshll.u32 %s2967_s0, 4  ;;  %s75_s28 = int_to_ptr.vmem [resolvable:$true] %s74_s28 }
  0x13   :  { %80 = dma.hbm_to_vmem [thread:$0]  %s73_s27, 1024, %s75_s28, [#allocation9], %s2961_s13, %s2961_s13, %s2962_s14  }
  0x14   :  { %2949 = dma.done.wait [#allocation3], 896  }
  0x15   :  { %2950 = vsyncadd [#allocation3], 4294966400 }
  0x16   :  { %2951 = dma.done.wait [#allocation6], 18864  }
  0x17   :  { %2952 = vsyncadd [#allocation6], 4294948432 }
  0x18   :  { %2953 = dma.done.wait [#allocation9], 4096  }
  0x19   :  { %2954 = vsyncadd [#allocation9], 4294963200  ;;  %v1962_v0 = vld [vmem:[#allocation5 + $0xa8] sm:$0xf]  ;;  %v2624_v1 = vld [vmem:[#allocation5 + $0xb0] sm:$0xf0] }
  0x1a   :  { %v2058_v2 = vld [vmem:[#allocation5 + $0x168] sm:$0xf]  ;;  %v1963_v3 = vor.u32 %v2624_v1, %v1962_v0  ;;  %v2648_v4 = vld [vmem:[#allocation5 + $0x170] sm:$0xf0]  ;;  %v1950_v11 = vld [vmem:[#allocation5 + $0x90] sm:$0xf] }
  0x1b   :  { %v2154_v5 = vld [vmem:[#allocation5 + $0x228] sm:$0xf]  ;;  %v2672_v6 = vld [vmem:[#allocation5 + $0x230] sm:$0xf0]  ;;  %v2059_v7 = vor.u32 %v2648_v4, %v2058_v2  ;;  %v2621_v13 = vld [vmem:[#allocation5 + $0x98] sm:$0xf0] }
  0x1c   :  { %v2155_v8 = vor.u32 %v2672_v6, %v2154_v5  ;;  %v2250_v9 = vld [vmem:[#allocation5 + $0x2e8] sm:$0xf]  ;;  %v2696_v10 = vld [vmem:[#allocation5 + $0x2f0] sm:$0xf0]  ;;  %1139 = vmatpush.bf16.msra.mxu0 %v1963_v3  ;;  %v2046_v14 = vld [vmem:[#allocation5 + $0x150] sm:$0xf]  ;;  %v1951_v16 = vor.u32 %v2621_v13, %v1950_v11 }
  0x1d   :  { %v2251_v12 = vor.u32 %v2696_v10, %v2250_v9  ;;  %v2645_v15 = vld [vmem:[#allocation5 + $0x158] sm:$0xf0]  ;;  %1153 = vmatpush.bf16.msra.mxu1 %v2059_v7  ;;  %v2142_v18 = vld [vmem:[#allocation5 + $0x210] sm:$0xf]  ;;  %v1938_v23 = vld [vmem:[#allocation5 + $0x78] sm:$0xf] }
  0x1e   :  { %1167 = vmatpush.bf16.msra.mxu2 %v2155_v8  ;;  %v2047_v17 = vor.u32 %v2645_v15, %v2046_v14  ;;  %v2669_v19 = vld [vmem:[#allocation5 + $0x218] sm:$0xf0]  ;;  %v2238_v20 = vld [vmem:[#allocation5 + $0x2d0] sm:$0xf]  ;;  %v2618_v24 = vld [vmem:[#allocation5 + $0x80] sm:$0xf0] }
  0x1f   :  { %1181 = vmatpush.bf16.msra.mxu3 %v2251_v12  ;;  %v2143_v21 = vor.u32 %v2669_v19, %v2142_v18  ;;  %v2693_v22 = vld [vmem:[#allocation5 + $0x2d8] sm:$0xf0]  ;;  %v2034_v26 = vld [vmem:[#allocation5 + $0x138] sm:$0xf]  ;;  %v2642_v27 = vld [vmem:[#allocation5 + $0x140] sm:$0xf0]  ;;  %v1939_v29 = vor.u32 %v2618_v24, %v1938_v23 }
  0x20   :  { %v2239_v25 = vor.u32 %v2693_v22, %v2238_v20  ;;  %v2130_v28 = vld [vmem:[#allocation5 + $0x1f8] sm:$0xf]  ;;  %1140 = vmatpush.bf16.msra.mxu0 %v1951_v16  ;;  %v2666_v30 = vld [vmem:[#allocation5 + $0x200] sm:$0xf0]  ;;  %v2035_v33 = vor.u32 %v2642_v27, %v2034_v26  ;;  %v1926_v35 = vld [vmem:[#allocation5 + $0x60] sm:$0xf] }
  0x21   :  { %v2226_v31 = vld [vmem:[#allocation5 + $0x2b8] sm:$0xf]  ;;  %v2690_v32 = vld [vmem:[#allocation5 + $0x2c0] sm:$0xf0]  ;;  %1154 = vmatpush.bf16.msra.mxu1 %v2047_v17  ;;  %v2131_v34 = vor.u32 %v2666_v30, %v2130_v28  ;;  %v2615_v36 = vld [vmem:[#allocation5 + $0x68] sm:$0xf0] }
  0x22   :  { %1168 = vmatpush.bf16.msra.mxu2 %v2143_v21  ;;  %v2022_v37 = vld [vmem:[#allocation5 + $0x120] sm:$0xf]  ;;  %v2227_v38 = vor.u32 %v2690_v32, %v2226_v31  ;;  %v2639_v39 = vld [vmem:[#allocation5 + $0x128] sm:$0xf0]  ;;  %v1927_v44 = vor.u32 %v2615_v36, %v1926_v35  ;;  %v1914_v47 = vld [vmem:[#allocation5 + $0x48] sm:$0xf] }
  0x23   :  { %1182 = vmatpush.bf16.msra.mxu3 %v2239_v25  ;;  %v2118_v40 = vld [vmem:[#allocation5 + $0x1e0] sm:$0xf]  ;;  %v2663_v41 = vld [vmem:[#allocation5 + $0x1e8] sm:$0xf0]  ;;  %v2023_v45 = vor.u32 %v2639_v39, %v2022_v37  ;;  %v2612_v48 = vld [vmem:[#allocation5 + $0x50] sm:$0xf0] }
  0x24   :  { %v2214_v42 = vld [vmem:[#allocation5 + $0x2a0] sm:$0xf]  ;;  %v2687_v43 = vld [vmem:[#allocation5 + $0x2a8] sm:$0xf0]  ;;  %1141 = vmatpush.bf16.msra.mxu0 %v1939_v29  ;;  %v2119_v46 = vor.u32 %v2663_v41, %v2118_v40  ;;  %v2010_v49 = vld [vmem:[#allocation5 + $0x108] sm:$0xf]  ;;  %v1915_v56 = vor.u32 %v2612_v48, %v1914_v47 }
  0x25   :  { %1155 = vmatpush.bf16.msra.mxu1 %v2035_v33  ;;  %v2215_v50 = vor.u32 %v2687_v43, %v2214_v42  ;;  %v2636_v51 = vld [vmem:[#allocation5 + $0x110] sm:$0xf0]  ;;  %v2106_v52 = vld [vmem:[#allocation5 + $0x1c8] sm:$0xf]  ;;  %v1902_v59 = vld [vmem:[#allocation5 + $0x30] sm:$0xf] }
  0x26   :  { %1169 = vmatpush.bf16.msra.mxu2 %v2131_v34  ;;  %v2660_v53 = vld [vmem:[#allocation5 + $0x1d0] sm:$0xf0]  ;;  %v2202_v54 = vld [vmem:[#allocation5 + $0x288] sm:$0xf]  ;;  %v2011_v57 = vor.u32 %v2636_v51, %v2010_v49  ;;  %v2609_v60 = vld [vmem:[#allocation5 + $0x38] sm:$0xf0] }
  0x27   :  { %1183 = vmatpush.bf16.msra.mxu3 %v2227_v38  ;;  %v2684_v55 = vld [vmem:[#allocation5 + $0x290] sm:$0xf0]  ;;  %v2107_v58 = vor.u32 %v2660_v53, %v2106_v52  ;;  %v1998_v61 = vld [vmem:[#allocation5 + $0xf0] sm:$0xf]  ;;  %v2633_v63 = vld [vmem:[#allocation5 + $0xf8] sm:$0xf0]  ;;  %v1903_v4 = vor.u32 %v2609_v60, %v1902_v59 }
  0x28   :  { %1142 = vmatpush.bf16.msra.mxu0 %v1927_v44  ;;  %v2203_v62 = vor.u32 %v2684_v55, %v2202_v54  ;;  %v2094_v0 = vld [vmem:[#allocation5 + $0x1b0] sm:$0xf]  ;;  %v2657_v1 = vld [vmem:[#allocation5 + $0x1b8] sm:$0xf0]  ;;  %v1999_v5 = vor.u32 %v2633_v63, %v1998_v61  ;;  %v1890_v7 = vld [vmem:[#allocation5 + $0x18] sm:$0xf] }
  0x29   :  { %1156 = vmatpush.bf16.msra.mxu1 %v2023_v45  ;;  %v2190_v2 = vld [vmem:[#allocation5 + $0x270] sm:$0xf]  ;;  %v2681_v3 = vld [vmem:[#allocation5 + $0x278] sm:$0xf0]  ;;  %v2095_v6 = vor.u32 %v2657_v1, %v2094_v0  ;;  %v2606_v8 = vld [vmem:[#allocation5 + $0x20] sm:$0xf0] }
  0x2a   :  { %1170 = vmatpush.bf16.msra.mxu2 %v2119_v46  ;;  %v1986_v9 = vld [vmem:[#allocation5 + $0xd8] sm:$0xf]  ;;  %v2191_v10 = vor.u32 %v2681_v3, %v2190_v2  ;;  %v2630_v11 = vld [vmem:[#allocation5 + $0xe0] sm:$0xf0]  ;;  %v1891_v16 = vor.u32 %v2606_v8, %v1890_v7  ;;  %v1878_v17 = vld [vmem:[#allocation5] sm:$0xf] }
  0x2b   :  { %1184 = vmatpush.bf16.msra.mxu3 %v2215_v50  ;;  %v2082_v12 = vld [vmem:[#allocation5 + $0x198] sm:$0xf]  ;;  %v2654_v13 = vld [vmem:[#allocation5 + $0x1a0] sm:$0xf0]  ;;  %v2603_v18 = vld [vmem:[#allocation5 + $0x8] sm:$0xf0]  ;;  %v1987_v19 = vor.u32 %v2630_v11, %v1986_v9 }
  0x2c   :  { %1143 = vmatpush.bf16.msra.mxu0 %v1915_v56  ;;  %v2178_v14 = vld [vmem:[#allocation5 + $0x258] sm:$0xf]  ;;  %v2678_v15 = vld [vmem:[#allocation5 + $0x260] sm:$0xf0]  ;;  %v2083_v20 = vor.u32 %v2654_v13, %v2082_v12  ;;  %v1974_v21 = vld [vmem:[#allocation5 + $0xc0] sm:$0xf]  ;;  %v1879_v31 = vor.u32 %v2603_v18, %v1878_v17 }
  0x2d   :  { %1157 = vmatpush.bf16.msra.mxu1 %v2011_v57  ;;  %v2627_v22 = vld [vmem:[#allocation5 + $0xc8] sm:$0xf0]  ;;  %v2070_v23 = vld [vmem:[#allocation5 + $0x180] sm:$0xf]  ;;  %v2179_v24 = vor.u32 %v2678_v15, %v2178_v14  ;;  %v2346_v28 = vld [vmem:[#allocation5 + $0x3a8] sm:$0xf] }
  0x2e   :  { %1171 = vmatpush.bf16.msra.mxu2 %v2107_v58  ;;  %v2651_v25 = vld [vmem:[#allocation5 + $0x188] sm:$0xf0]  ;;  %v2166_v26 = vld [vmem:[#allocation5 + $0x240] sm:$0xf]  ;;  %v2720_v29 = vld [vmem:[#allocation5 + $0x3b0] sm:$0xf0]  ;;  %v1975_v35 = vor.u32 %v2627_v22, %v1974_v21 }
  0x2f   :  { %1185 = vmatpush.bf16.msra.mxu3 %v2203_v62  ;;  %v2675_v27 = vld [vmem:[#allocation5 + $0x248] sm:$0xf0]  ;;  %v2442_v30 = vld [vmem:[#allocation5 + $0x468] sm:$0xf]  ;;  %v2744_v32 = vld [vmem:[#allocation5 + $0x470] sm:$0xf0]  ;;  %v2071_v36 = vor.u32 %v2651_v25, %v2070_v23  ;;  %v2347_v41 = vor.u32 %v2720_v29, %v2346_v28 }
  0x30   :  { %1144 = vmatpush.bf16.msra.mxu0 %v1903_v4  ;;  %v2623_v33 = vld [vmem:[#allocation5 + $0xac] sm:$0xf]  ;;  %v1964_v34 = vld [vmem:[#allocation5 + $0xb4] sm:$0xf0]  ;;  %v2454_v37 = vld [vmem:[#allocation5 + $0x480] sm:$0xf]  ;;  %v2167_v40 = vor.u32 %v2675_v27, %v2166_v26  ;;  %v2443_v45 = vor.u32 %v2744_v32, %v2442_v30 }
  0x31   :  { %1158 = vmatpush.bf16.msra.mxu1 %v1999_v5  ;;  %v2747_v38 = vld [vmem:[#allocation5 + $0x488] sm:$0xf0]  ;;  %v1858_v39 = vld [vmem:[#allocation2 + $0x8] sm:$0xf]  ;;  %v2060_v44 = vld [vmem:[#allocation5 + $0x174] sm:$0xf0]  ;;  %v1967_v46 = vor.u32 %v2623_v33, %v1964_v34 }
  0x32   :  { %1172 = vmatpush.bf16.msra.mxu2 %v2095_v6  ;;  %v2599_v42 = vld [vmem:[#allocation2 + $0x20] sm:$0xf0]  ;;  %v2334_v47 = vld [vmem:[#allocation5 + $0x390] sm:$0xf]  ;;  %v2717_v48 = vld [vmem:[#allocation5 + $0x398] sm:$0xf0]  ;;  %v2455_v50 = vor.u32 %v2747_v38, %v2454_v37 }
  0x33   :  { %1186 = vmatpush.bf16.msra.mxu3 %v2191_v10  ;;  %v2647_v43 = vld [vmem:[#allocation5 + $0x16c] sm:$0xf]  ;;  %v2430_v49 = vld [vmem:[#allocation5 + $0x450] sm:$0xf]  ;;  %v2741_v51 = vld [vmem:[#allocation5 + $0x458] sm:$0xf0]  ;;  %v3026_v54 = vor.u32 %v2599_v42, %v1858_v39  ;;  %v2335_v57 = vor.u32 %v2717_v48, %v2334_v47 }
  0x34   :  { %1145 = vmatpush.bf16.msra.mxu0 %v1891_v16  ;;  %v2620_v52 = vld [vmem:[#allocation5 + $0x94] sm:$0xf]  ;;  %v1952_v53 = vld [vmem:[#allocation5 + $0x9c] sm:$0xf0]  ;;  %v1850_v55 = vld [vmem:[#allocation2] sm:$0xf]  ;;  %v2063_v56 = vor.u32 %v2647_v43, %v2060_v44  ;;  %v2431_v61 = vor.u32 %v2741_v51, %v2430_v49 }
  0x35   :  { %1159 = vmatpush.bf16.msra.mxu1 %v1987_v19  ;;  %v2644_v58 = vld [vmem:[#allocation5 + $0x154] sm:$0xf]  ;;  %v2048_v59 = vld [vmem:[#allocation5 + $0x15c] sm:$0xf0]  ;;  %v2598_v60 = vld [vmem:[#allocation2 + $0x18] sm:$0xf0]  ;;  %v1955_v62 = vor.u32 %v2620_v52, %v1952_v53 }
  0x36   :  { %1173 = vmatpush.bf16.msra.mxu2 %v2083_v20  ;;  %v2322_v63 = vld [vmem:[#allocation5 + $0x378] sm:$0xf]  ;;  %v2714_v0 = vld [vmem:[#allocation5 + $0x380] sm:$0xf0]  ;;  %v3028_v2 = vor.u32 %v2598_v60, %v1850_v55  ;;  %v2617_v4 = vld [vmem:[#allocation5 + $0x7c] sm:$0xf]  ;;  %v2051_v9 = vor.u32 %v2644_v58, %v2048_v59 }
  0x37   :  { %1187 = vmatpush.bf16.msra.mxu3 %v2179_v24  ;;  %v2418_v1 = vld [vmem:[#allocation5 + $0x438] sm:$0xf]  ;;  %v2738_v3 = vld [vmem:[#allocation5 + $0x440] sm:$0xf0]  ;;  %v1940_v5 = vld [vmem:[#allocation5 + $0x84] sm:$0xf0]  ;;  %v2323_v10 = vor.u32 %v2714_v0, %v2322_v63 }
  0x38   :  { %1146 = vmatpush.bf16.msra.mxu0 %v1879_v31  ;;  %v2595_v6 = vld [vmem:[#allocation2 + $0x4] sm:$0xf]  ;;  %v1852_v7 = vld [vmem:[#allocation2 + $0x1c] sm:$0xf0]  ;;  %v2596_v8 = vld [vmem:[#allocation2 + $0xc] sm:$0xf]  ;;  %v2419_v15 = vor.u32 %v2738_v3, %v2418_v1  ;;  %v1943_v16 = vor.u32 %v2617_v4, %v1940_v5 }
  0x39   :  { %1160 = vmatpush.bf16.msra.mxu1 %v1975_v35  ;;  %v2641_v11 = vld [vmem:[#allocation5 + $0x13c] sm:$0xf]  ;;  %v2036_v12 = vld [vmem:[#allocation5 + $0x144] sm:$0xf0]  ;;  %v3032_v13 = vor.u32 %v2595_v6, %v1852_v7  ;;  %v1860_v14 = vld [vmem:[#allocation2 + $0x24] sm:$0xf0] }
  0x3a   :  { %1174 = vmatpush.bf16.msra.mxu2 %v2071_v36  ;;  %v2310_v17 = vld [vmem:[#allocation5 + $0x360] sm:$0xf]  ;;  %v2711_v18 = vld [vmem:[#allocation5 + $0x368] sm:$0xf0]  ;;  %v3034_v20 = vor.u32 %v2596_v8, %v1860_v14  ;;  %v2614_v22 = vld [vmem:[#allocation5 + $0x64] sm:$0xf]  ;;  %v2039_v24 = vor.u32 %v2641_v11, %v2036_v12 }
  0x3b   :  { %1188 = vmatpush.bf16.msra.mxu3 %v2167_v40  ;;  %1147 = vmatmul.bf16.vlgmr.msra.gmra.mxu0 %v3028_v2  ;;  %v2406_v19 = vld [vmem:[#allocation5 + $0x420] sm:$0xf]  ;;  %v2735_v21 = vld [vmem:[#allocation5 + $0x428] sm:$0xf0]  ;;  %v1928_v23 = vld [vmem:[#allocation5 + $0x6c] sm:$0xf0]  ;;  %v2311_v25 = vor.u32 %v2711_v18, %v2310_v17 }
  0x3c   :  { %1195 = vmatpush.bf16.msrb.mxu0 %v2347_v41  ;;  %1161 = vmatmul.bf16.vlgmr.msra.gmra.mxu1 %v3032_v13  ;;  %v2638_v26 = vld [vmem:[#allocation5 + $0x124] sm:$0xf]  ;;  %v2024_v27 = vld [vmem:[#allocation5 + $0x12c] sm:$0xf0]  ;;  %v2407_v28 = vor.u32 %v2735_v21, %v2406_v19  ;;  %v1931_v29 = vor.u32 %v2614_v22, %v1928_v23  ;;  %v2298_v30 = vld [vmem:[#allocation5 + $0x348] sm:$0xf] }
  0x3d   :  { %1209 = vmatpush.bf16.msrb.mxu1 %v2443_v45  ;;  %1175 = vmatmul.bf16.vlgmr.msra.gmra.mxu2 %v3026_v54  ;;  %v2708_v31 = vld [vmem:[#allocation5 + $0x350] sm:$0xf0]  ;;  %v2394_v32 = vld [vmem:[#allocation5 + $0x408] sm:$0xf]  ;;  %v2611_v34 = vld [vmem:[#allocation5 + $0x4c] sm:$0xf]  ;;  %v2027_v37 = vor.u32 %v2638_v26, %v2024_v27 }
  0x3e   :  { %1230 = vmatpush.bf16.msrb.mxu2 %v2455_v50  ;;  %1189 = vmatmul.bf16.vlgmr.msra.gmra.mxu3 %v3034_v20  ;;  %v2732_v33 = vld [vmem:[#allocation5 + $0x410] sm:$0xf0]  ;;  %v1916_v35 = vld [vmem:[#allocation5 + $0x54] sm:$0xf0]  ;;  %v2635_v36 = vld [vmem:[#allocation5 + $0x10c] sm:$0xf]  ;;  %v2299_v38 = vor.u32 %v2708_v31, %v2298_v30 }
  0x3f   :  { %1237 = vmatpush.bf16.msrb.mxu3 %v1967_v46  ;;  %v2012_v39 = vld [vmem:[#allocation5 + $0x114] sm:$0xf0]  ;;  %v1874_v40 = vld [vmem:[#allocation2 + $0x18] sm:$0xf]  ;;  %v2601_v41 = vld [vmem:[#allocation2 + $0x30] sm:$0xf0]  ;;  %v2395_v42 = vor.u32 %v2732_v33, %v2394_v32  ;;  %v1919_v43 = vor.u32 %v2611_v34, %v1916_v35 }
  0x40   :  { %1196 = vmatpush.bf16.msrb.mxu0 %v2335_v57  ;;  %v2286_v44 = vld [vmem:[#allocation5 + $0x330] sm:$0xf]  ;;  %v2705_v45 = vld [vmem:[#allocation5 + $0x338] sm:$0xf0]  ;;  %v2608_v48 = vld [vmem:[#allocation5 + $0x34] sm:$0xf]  ;;  %v3038_v50 = vor.u32 %v2601_v41, %v1874_v40  ;;  %v2015_v51 = vor.u32 %v2635_v36, %v2012_v39 }
  0x41   :  { %1210 = vmatpush.bf16.msrb.mxu1 %v2431_v61  ;;  %v2382_v46 = vld [vmem:[#allocation5 + $0x3f0] sm:$0xf]  ;;  %v2729_v47 = vld [vmem:[#allocation5 + $0x3f8] sm:$0xf0]  ;;  %v1904_v49 = vld [vmem:[#allocation5 + $0x3c] sm:$0xf0]  ;;  %v2287_v52 = vor.u32 %v2705_v45, %v2286_v44 }
  0x42   :  { %1251 = vmatpush.bf16.msra.mxu2 %v2063_v56  ;;  %v2632_v53 = vld [vmem:[#allocation5 + $0xf4] sm:$0xf]  ;;  %v2000_v55 = vld [vmem:[#allocation5 + $0xfc] sm:$0xf0]  ;;  %vm1135_vm0 = vcmask 130048   ;;  %v2383_v56 = vor.u32 %v2729_v47, %v2382_v46  ;;  %v1907_v57 = vor.u32 %v2608_v48, %v1904_v49 }
  0x43   :  { %1238 = vmatpush.bf16.msrb.mxu3 %v1955_v62  ;;  %v2274_v58 = vld [vmem:[#allocation5 + $0x318] sm:$0xf]  ;;  %v2702_v59 = vld [vmem:[#allocation5 + $0x320] sm:$0xf0]  ;;  %v2605_v62 = vld [vmem:[#allocation5 + $0x1c] sm:$0xf]  ;;  %v2003_v3 = vor.u32 %v2632_v53, %v2000_v55 }
  0x44   :  { %1197 = vmatpush.bf16.msrb.mxu0 %v2323_v10  ;;  %v2370_v60 = vld [vmem:[#allocation5 + $0x3d8] sm:$0xf]  ;;  %v2726_v61 = vld [vmem:[#allocation5 + $0x3e0] sm:$0xf0]  ;;  %v1892_v63 = vld [vmem:[#allocation5 + $0x24] sm:$0xf0]  ;;  %v2275_v4 = vor.u32 %v2702_v59, %v2274_v58 }
  0x45   :  { %1211 = vmatpush.bf16.msrb.mxu1 %v2419_v15  ;;  %v2629_v0 = vld [vmem:[#allocation5 + $0xdc] sm:$0xf]  ;;  %v1988_v1 = vld [vmem:[#allocation5 + $0xe4] sm:$0xf0]  ;;  %v2262_v5 = vld [vmem:[#allocation5 + $0x300] sm:$0xf]  ;;  %v2371_v8 = vor.u32 %v2726_v61, %v2370_v60 }
  0x46   :  { %1252 = vmatpush.bf16.msra.mxu2 %v2051_v9  ;;  %v2699_v6 = vld [vmem:[#allocation5 + $0x308] sm:$0xf0]  ;;  %v2358_v7 = vld [vmem:[#allocation5 + $0x3c0] sm:$0xf]  ;;  %v1895_v9 = vor.u32 %v2605_v62, %v1892_v63  ;;  %v2602_v11 = vld [vmem:[#allocation5 + $0x4] sm:$0xf]  ;;  %v1991_v21 = vor.u32 %v2629_v0, %v1988_v1 }
  0x47   :  { %1239 = vmatpush.bf16.msrb.mxu3 %v1943_v16  ;;  %v2723_v10 = vld [vmem:[#allocation5 + $0x3c8] sm:$0xf0]  ;;  %v1880_v12 = vld [vmem:[#allocation5 + $0xc] sm:$0xf0]  ;;  %v2156_v15 = vld [vmem:[#allocation5 + $0x234] sm:$0xf0]  ;;  %v2263_v22 = vor.u32 %v2699_v6, %v2262_v5 }
  0x48   :  { %1198 = vmatpush.bf16.msrb.mxu0 %v2311_v25  ;;  %v2671_v14 = vld [vmem:[#allocation5 + $0x22c] sm:$0xf]  ;;  %v2252_v17 = vld [vmem:[#allocation5 + $0x2f4] sm:$0xf0]  ;;  %v2626_v25 = vld [vmem:[#allocation5 + $0xc4] sm:$0xf]  ;;  %v2359_v26 = vor.u32 %v2723_v10, %v2358_v7  ;;  %v1883_v27 = vor.u32 %v2602_v11, %v1880_v12 }
  0x49   :  { %1212 = vmatpush.bf16.msrb.mxu1 %v2407_v28  ;;  %v2695_v16 = vld [vmem:[#allocation5 + $0x2ec] sm:$0xf]  ;;  %v2348_v19 = vld [vmem:[#allocation5 + $0x3b4] sm:$0xf0]  ;;  %v1976_v28 = vld [vmem:[#allocation5 + $0xcc] sm:$0xf0]  ;;  %v2159_v31 = vor.u32 %v2671_v14, %v2156_v15 }
  0x4a   :  { %1253 = vmatpush.bf16.msra.mxu2 %v2039_v24  ;;  %v2719_v18 = vld [vmem:[#allocation5 + $0x3ac] sm:$0xf]  ;;  %v1866_v23 = vld [vmem:[#allocation2 + $0x10] sm:$0xf]  ;;  %v2600_v24 = vld [vmem:[#allocation2 + $0x28] sm:$0xf0]  ;;  %v2255_v32 = vor.u32 %v2695_v16, %v2252_v17  ;;  %v1979_v41 = vor.u32 %v2626_v25, %v1976_v28 }
  0x4b   :  { %1240 = vmatpush.bf16.msrb.mxu3 %v1931_v29  ;;  %v2597_v29 = vld [vmem:[#allocation2 + $0x14] sm:$0xf]  ;;  %v1868_v30 = vld [vmem:[#allocation2 + $0x2c] sm:$0xf0]  ;;  %v2743_v33 = vld [vmem:[#allocation5 + $0x46c] sm:$0xf]  ;;  %v2351_v36 = vor.u32 %v2719_v18, %v2348_v19 }
  0x4c   :  { %1199 = vmatpush.bf16.msrb.mxu0 %v2299_v38  ;;  %v2444_v34 = vld [vmem:[#allocation5 + $0x474] sm:$0xf0]  ;;  %v2668_v35 = vld [vmem:[#allocation5 + $0x214] sm:$0xf]  ;;  %v2144_v38 = vld [vmem:[#allocation5 + $0x21c] sm:$0xf0] }
  0x4d   :  { %1213 = vmatpush.bf16.msrb.mxu1 %v2395_v42  ;;  %2464 = vmatmul.msk.bf16.vlgmr.msrb.gmra.mxu2 %vm1135_vm0, %v3038_v50  ;;  %v2692_v39 = vld [vmem:[#allocation5 + $0x2d4] sm:$0xf]  ;;  %v2240_v40 = vld [vmem:[#allocation5 + $0x2dc] sm:$0xf0]  ;;  %v3044_v42 = vor.u32 %v2597_v29, %v1868_v30  ;;  %v2447_v45 = vor.u32 %v2743_v33, %v2444_v34  ;;  %v2147_v46 = vor.u32 %v2668_v35, %v2144_v38  ;;  %v2132_v53 = vld [vmem:[#allocation5 + $0x204] sm:$0xf0] }
  0x4e   :  { %1254 = vmatpush.bf16.msra.mxu2 %v2027_v37  ;;  %v3042_v37 = vor.u32 %v2600_v24, %v1866_v23  ;;  %v2336_v44 = vld [vmem:[#allocation5 + $0x39c] sm:$0xf0]  ;;  %v2243_v47 = vor.u32 %v2692_v39, %v2240_v40  ;;  %v2740_v48 = vld [vmem:[#allocation5 + $0x454] sm:$0xf]  ;;  %v2689_v55 = vld [vmem:[#allocation5 + $0x2bc] sm:$0xf] }
  0x4f   :  { %1241 = vmatpush.bf16.msrb.mxu3 %v1919_v43  ;;  %v2716_v43 = vld [vmem:[#allocation5 + $0x394] sm:$0xf]  ;;  %v2432_v49 = vld [vmem:[#allocation5 + $0x45c] sm:$0xf0]  ;;  %v2324_v58 = vld [vmem:[#allocation5 + $0x384] sm:$0xf0] }
  0x50   :  { %1200 = vmatpush.bf16.msrb.mxu0 %v2287_v52  ;;  %v2339_v52 = vor.u32 %v2716_v43, %v2336_v44  ;;  %v2435_v59 = vor.u32 %v2740_v48, %v2432_v49  ;;  %v2737_v62 = vld [vmem:[#allocation5 + $0x43c] sm:$0xf]  ;;  %v2420_v63 = vld [vmem:[#allocation5 + $0x444] sm:$0xf0]  ;;  %v2662_v0 = vld [vmem:[#allocation5 + $0x1e4] sm:$0xf] }
  0x51   :  { %1214 = vmatpush.bf16.msrb.mxu1 %v2383_v56  ;;  %v2228_v56 = vld [vmem:[#allocation5 + $0x2c4] sm:$0xf0]  ;;  %v2216_v5 = vld [vmem:[#allocation5 + $0x2ac] sm:$0xf0]  ;;  %v2710_v6 = vld [vmem:[#allocation5 + $0x364] sm:$0xf] }
  0x52   :  { %1255 = vmatpush.bf16.msra.mxu2 %v2015_v51  ;;  %v2665_v51 = vld [vmem:[#allocation5 + $0x1fc] sm:$0xf]  ;;  %v2231_v61 = vor.u32 %v2689_v55, %v2228_v56  ;;  %v2312_v7 = vld [vmem:[#allocation5 + $0x36c] sm:$0xf0]  ;;  %v2734_v11 = vld [vmem:[#allocation5 + $0x424] sm:$0xf] }
  0x53   :  { %1242 = vmatpush.bf16.msrb.mxu3 %v1907_v57  ;;  %v2713_v57 = vld [vmem:[#allocation5 + $0x37c] sm:$0xf]  ;;  %v2135_v60 = vor.u32 %v2665_v51, %v2132_v53  ;;  %v2408_v12 = vld [vmem:[#allocation5 + $0x42c] sm:$0xf0]  ;;  %v2659_v14 = vld [vmem:[#allocation5 + $0x1cc] sm:$0xf]  ;;  %v2315_v15 = vor.u32 %v2710_v6, %v2312_v7 }
  0x54   :  { %1201 = vmatpush.bf16.msrb.mxu0 %v2275_v4  ;;  %v2327_v1 = vor.u32 %v2713_v57, %v2324_v58  ;;  %v2686_v4 = vld [vmem:[#allocation5 + $0x2a4] sm:$0xf]  ;;  %v2108_v16 = vld [vmem:[#allocation5 + $0x1d4] sm:$0xf0]  ;;  %v2683_v17 = vld [vmem:[#allocation5 + $0x28c] sm:$0xf] }
  0x55   :  { %1215 = vmatpush.bf16.msrb.mxu1 %v2371_v8  ;;  %v2423_v8 = vor.u32 %v2737_v62, %v2420_v63  ;;  %v2219_v10 = vor.u32 %v2686_v4, %v2216_v5  ;;  %v2204_v18 = vld [vmem:[#allocation5 + $0x294] sm:$0xf0]  ;;  %v2707_v19 = vld [vmem:[#allocation5 + $0x34c] sm:$0xf]  ;;  %v2111_v23 = vor.u32 %v2659_v14, %v2108_v16  ;;  %v2096_v29 = vld [vmem:[#allocation5 + $0x1bc] sm:$0xf0] }
  0x56   :  { %1256 = vmatpush.bf16.msra.mxu2 %v2003_v3  ;;  %v2120_v3 = vld [vmem:[#allocation5 + $0x1ec] sm:$0xf0]  ;;  %v2207_v24 = vor.u32 %v2683_v17, %v2204_v18  ;;  %v2731_v25 = vld [vmem:[#allocation5 + $0x40c] sm:$0xf]  ;;  %v2680_v30 = vld [vmem:[#allocation5 + $0x274] sm:$0xf] }
  0x57   :  { %1243 = vmatpush.bf16.msrb.mxu3 %v1895_v9  ;;  %v2123_v9 = vor.u32 %v2662_v0, %v2120_v3  ;;  %v2288_v33 = vld [vmem:[#allocation5 + $0x33c] sm:$0xf0]  ;;  %v2728_v38 = vld [vmem:[#allocation5 + $0x3f4] sm:$0xf]  ;;  %v2653_v40 = vld [vmem:[#allocation5 + $0x19c] sm:$0xf] }
  0x58   :  { %1202 = vmatpush.bf16.msrb.mxu0 %v2263_v22  ;;  %v2411_v22 = vor.u32 %v2734_v11, %v2408_v12  ;;  %v2384_v39 = vld [vmem:[#allocation5 + $0x3fc] sm:$0xf0]  ;;  %v2084_v43 = vld [vmem:[#allocation5 + $0x1a4] sm:$0xf0]  ;;  %v2677_v44 = vld [vmem:[#allocation5 + $0x25c] sm:$0xf] }
  0x59   :  { %1216 = vmatpush.bf16.msrb.mxu1 %v2359_v26  ;;  %v2396_v26 = vld [vmem:[#allocation5 + $0x414] sm:$0xf0]  ;;  %v2387_v48 = vor.u32 %v2728_v38, %v2384_v39  ;;  %v2725_v49 = vld [vmem:[#allocation5 + $0x3dc] sm:$0xf]  ;;  %v2372_v51 = vld [vmem:[#allocation5 + $0x3e4] sm:$0xf0] }
  0x5a   :  { %1257 = vmatpush.bf16.msra.mxu2 %v1991_v21  ;;  %v2300_v21 = vld [vmem:[#allocation5 + $0x354] sm:$0xf0]  ;;  %v2399_v34 = vor.u32 %v2731_v25, %v2396_v26  ;;  %v2650_v55 = vld [vmem:[#allocation5 + $0x184] sm:$0xf]  ;;  %v2072_v56 = vld [vmem:[#allocation5 + $0x18c] sm:$0xf0] }
  0x5b   :  { %1244 = vmatpush.bf16.msrb.mxu3 %v1883_v27  ;;  %1203 = vmatmul.bf16.vlgmr.msrb.gmra.mxu0 %v3042_v37  ;;  %v2656_v27 = vld [vmem:[#allocation5 + $0x1b4] sm:$0xf]  ;;  %v2303_v28 = vor.u32 %v2707_v19, %v2300_v21  ;;  %v2674_v57 = vld [vmem:[#allocation5 + $0x244] sm:$0xf]  ;;  %v1970_v62 = vld [vmem:[#allocation5 + $0xb0] sm:$0xf]  ;;  %v2075_v6 = vor.u32 %v2650_v55, %v2072_v56 }
  0x5c   :  { %1265 = vmatpush.bf16.msra.mxu0 %v2159_v31  ;;  %1217 = vmatmul.bf16.vlgmr.msrb.gmra.mxu1 %v3044_v42  ;;  %v2192_v31 = vld [vmem:[#allocation5 + $0x27c] sm:$0xf0]  ;;  %v2099_v35 = vor.u32 %v2656_v27, %v2096_v29  ;;  %v2625_v63 = vld [vmem:[#allocation5 + $0xb8] sm:$0xf0]  ;;  %v2066_v0 = vld [vmem:[#allocation5 + $0x170] sm:$0xf] }
  0x5d   :  { %1279 = vmatpush.bf16.msra.mxu1 %v2255_v32  ;;  %v2704_v32 = vld [vmem:[#allocation5 + $0x334] sm:$0xf]  ;;  %v2649_v3 = vld [vmem:[#allocation5 + $0x178] sm:$0xf0]  ;;  %v2746_v4 = vld [vmem:[#allocation5 + $0x484] sm:$0xf]  ;;  %v1971_v11 = vor.u32 %v2625_v63, %v1970_v62 }
  0x5e   :  { %1258 = vmatpush.bf16.msra.mxu2 %v1979_v41  ;;  %1245 = vmatmul.bf16.vlgmr.msrb.gmra.mxu3 %v3028_v2  ;;  %v2291_v41 = vor.u32 %v2704_v32, %v2288_v33  ;;  %v2456_v5 = vld [vmem:[#allocation5 + $0x48c] sm:$0xf0]  ;;  %v1958_v12 = vld [vmem:[#allocation5 + $0x98] sm:$0xf]  ;;  %v2622_v14 = vld [vmem:[#allocation5 + $0xa0] sm:$0xf0] }
  0x5f   :  { %1293 = vmatpush.bf16.msra.mxu3 %v2351_v36  ;;  %v2195_v36 = vor.u32 %v2680_v30, %v2192_v31  ;;  %v2258_v16 = vld [vmem:[#allocation5 + $0x2f0] sm:$0xf]  ;;  %v2697_v17 = vld [vmem:[#allocation5 + $0x2f8] sm:$0xf0]  ;;  %v2459_v18 = vor.u32 %v2746_v4, %v2456_v5  ;;  %v2054_v21 = vld [vmem:[#allocation5 + $0x158] sm:$0xf]  ;;  %v1959_v25 = vor.u32 %v2622_v14, %v1958_v12 }
  0x60   :  { %1266 = vmatpush.bf16.msra.mxu0 %v2147_v46  ;;  %v2701_v46 = vld [vmem:[#allocation5 + $0x31c] sm:$0xf]  ;;  %v1946_v26 = vld [vmem:[#allocation5 + $0x80] sm:$0xf]  ;;  %v2259_v27 = vor.u32 %v2697_v17, %v2258_v16  ;;  %v2619_v29 = vld [vmem:[#allocation5 + $0x88] sm:$0xf0] }
  0x61   :  { %1280 = vmatpush.bf16.msra.mxu1 %v2243_v47  ;;  %1259 = vmatmul.bf16.vlgmr.msra.gmra.mxu2 %v3032_v13  ;;  %v2276_v47 = vld [vmem:[#allocation5 + $0x324] sm:$0xf0]  ;;  %v2246_v30 = vld [vmem:[#allocation5 + $0x2d8] sm:$0xf]  ;;  %v2694_v31 = vld [vmem:[#allocation5 + $0x2e0] sm:$0xf0]  ;;  %v1947_v38 = vor.u32 %v2619_v29, %v1946_v26 }
  0x62   :  { %1307 = vmatpush.bf16.msrb.mxu2 %v2447_v45  ;;  %v2180_v45 = vld [vmem:[#allocation5 + $0x264] sm:$0xf0]  ;;  %v2279_v58 = vor.u32 %v2701_v46, %v2276_v47  ;;  %v2042_v32 = vld [vmem:[#allocation5 + $0x140] sm:$0xf]  ;;  %v2643_v33 = vld [vmem:[#allocation5 + $0x148] sm:$0xf0] }
  0x63   :  { %1294 = vmatpush.bf16.msra.mxu3 %v2339_v52  ;;  %v2087_v52 = vor.u32 %v2653_v40, %v2084_v43  ;;  %v2183_v53 = vor.u32 %v2677_v44, %v2180_v45  ;;  %v1934_v39 = vld [vmem:[#allocation5 + $0x68] sm:$0xf]  ;;  %v2247_v40 = vor.u32 %v2694_v31, %v2246_v30  ;;  %v2616_v43 = vld [vmem:[#allocation5 + $0x70] sm:$0xf0]  ;;  %v2234_v44 = vld [vmem:[#allocation5 + $0x2c0] sm:$0xf] }
  0x64   :  { %1267 = vmatpush.bf16.msra.mxu0 %v2135_v60  ;;  %v2698_v60 = vld [vmem:[#allocation5 + $0x304] sm:$0xf]  ;;  %v2691_v45 = vld [vmem:[#allocation5 + $0x2c8] sm:$0xf0]  ;;  %v2030_v46 = vld [vmem:[#allocation5 + $0x128] sm:$0xf] }
  0x65   :  { %1281 = vmatpush.bf16.msra.mxu1 %v2231_v61  ;;  %v2264_v61 = vld [vmem:[#allocation5 + $0x30c] sm:$0xf0]  ;;  %v2640_v47 = vld [vmem:[#allocation5 + $0x130] sm:$0xf0]  ;;  %v2235_v55 = vor.u32 %v2691_v45, %v2234_v44  ;;  %v1898_v14 = vld [vmem:[#allocation5 + $0x20] sm:$0xf] }
  0x66   :  { %1308 = vmatpush.bf16.msrb.mxu2 %v2435_v59  ;;  %v2168_v59 = vld [vmem:[#allocation5 + $0x24c] sm:$0xf0]  ;;  %v2031_v56 = vor.u32 %v2640_v47, %v2030_v46  ;;  %v2664_v4 = vld [vmem:[#allocation5 + $0x1f0] sm:$0xf0]  ;;  %v2661_v17 = vld [vmem:[#allocation5 + $0x1d8] sm:$0xf0] }
  0x67   :  { %1295 = vmatpush.bf16.msra.mxu3 %v2327_v1  ;;  %v2375_v1 = vor.u32 %v2725_v49, %v2372_v51  ;;  %v2171_v7 = vor.u32 %v2674_v57, %v2168_v59  ;;  %v2138_v49 = vld [vmem:[#allocation5 + $0x200] sm:$0xf]  ;;  %v2667_v51 = vld [vmem:[#allocation5 + $0x208] sm:$0xf0]  ;;  %v2613_v57 = vld [vmem:[#allocation5 + $0x58] sm:$0xf0] }
  0x68   :  { %1268 = vmatpush.bf16.msra.mxu0 %v2123_v9  ;;  %v2360_v9 = vld [vmem:[#allocation5 + $0x3cc] sm:$0xf0]  ;;  %v2688_v59 = vld [vmem:[#allocation5 + $0x2b0] sm:$0xf0]  ;;  %v2139_v62 = vor.u32 %v2667_v51, %v2138_v49  ;;  %v2102_v30 = vld [vmem:[#allocation5 + $0x1b8] sm:$0xf] }
  0x69   :  { %1282 = vmatpush.bf16.msra.mxu1 %v2219_v10  ;;  %v2267_v10 = vor.u32 %v2698_v60, %v2264_v61  ;;  %v2018_v60 = vld [vmem:[#allocation5 + $0x110] sm:$0xf]  ;;  %v2637_v61 = vld [vmem:[#allocation5 + $0x118] sm:$0xf0]  ;;  %v2658_v31 = vld [vmem:[#allocation5 + $0x1c0] sm:$0xf0] }
  0x6a   :  { %1309 = vmatpush.bf16.msrb.mxu2 %v2423_v8  ;;  %v2722_v8 = vld [vmem:[#allocation5 + $0x3c4] sm:$0xf]  ;;  %v2019_v5 = vor.u32 %v2637_v61, %v2018_v60  ;;  %v2114_v16 = vld [vmem:[#allocation5 + $0x1d0] sm:$0xf]  ;;  %v2090_v46 = vld [vmem:[#allocation5 + $0x1a0] sm:$0xf] }
  0x6b   :  { %1296 = vmatpush.bf16.msra.mxu3 %v2315_v15  ;;  %v2067_v15 = vor.u32 %v2649_v3, %v2066_v0  ;;  %v2363_v19 = vor.u32 %v2722_v8, %v2360_v9  ;;  %v1910_v0 = vld [vmem:[#allocation5 + $0x38] sm:$0xf]  ;;  %v2126_v3 = vld [vmem:[#allocation5 + $0x1e8] sm:$0xf]  ;;  %v2685_v8 = vld [vmem:[#allocation5 + $0x298] sm:$0xf0]  ;;  %v2115_v26 = vor.u32 %v2661_v17, %v2114_v16 }
  0x6c   :  { %1269 = vmatpush.bf16.msra.mxu0 %v2111_v23  ;;  %v2162_v23 = vld [vmem:[#allocation5 + $0x230] sm:$0xf]  ;;  %v2006_v9 = vld [vmem:[#allocation5 + $0xf8] sm:$0xf]  ;;  %v2655_v47 = vld [vmem:[#allocation5 + $0x1a8] sm:$0xf0] }
  0x6d   :  { %1283 = vmatpush.bf16.msra.mxu1 %v2207_v24  ;;  %v2673_v24 = vld [vmem:[#allocation5 + $0x238] sm:$0xf0]  ;;  %v2174_v51 = vld [vmem:[#allocation5 + $0x248] sm:$0xf]  ;;  %v2736_v16 = vld [vmem:[#allocation5 + $0x430] sm:$0xf0] }
  0x6e   :  { %1310 = vmatpush.bf16.msrb.mxu2 %v2411_v22  ;;  %v2646_v22 = vld [vmem:[#allocation5 + $0x160] sm:$0xf0]  ;;  %v2078_v61 = vld [vmem:[#allocation5 + $0x188] sm:$0xf] }
  0x6f   :  { %1297 = vmatpush.bf16.msra.mxu3 %v2303_v28  ;;  %v2055_v28 = vor.u32 %v2646_v22, %v2054_v21  ;;  %v2198_v21 = vld [vmem:[#allocation5 + $0x278] sm:$0xf]  ;;  %v2682_v22 = vld [vmem:[#allocation5 + $0x280] sm:$0xf0] }
  0x70   :  { %1270 = vmatpush.bf16.msra.mxu0 %v2099_v35  ;;  %v2150_v35 = vld [vmem:[#allocation5 + $0x218] sm:$0xf]  ;;  %v2199_v29 = vor.u32 %v2682_v22, %v2198_v21  ;;  %v2733_v21 = vld [vmem:[#allocation5 + $0x418] sm:$0xf0] }
  0x71   :  { %1284 = vmatpush.bf16.msra.mxu1 %v2195_v36  ;;  %v2670_v36 = vld [vmem:[#allocation5 + $0x220] sm:$0xf0] }
  0x72   :  { %1311 = vmatpush.bf16.msrb.mxu2 %v2399_v34  ;;  %v2163_v34 = vor.u32 %v2673_v24, %v2162_v23  ;;  %v1994_v23 = vld [vmem:[#allocation5 + $0xe0] sm:$0xf]  ;;  %v2631_v24 = vld [vmem:[#allocation5 + $0xe8] sm:$0xf0] }
  0x73   :  { %1298 = vmatpush.bf16.msra.mxu3 %v2291_v41  ;;  %v2043_v41 = vor.u32 %v2643_v33, %v2042_v32  ;;  %v1995_v32 = vor.u32 %v2631_v24, %v1994_v23  ;;  %v1982_v33 = vld [vmem:[#allocation5 + $0xc8] sm:$0xf]  ;;  %v2294_v24 = vld [vmem:[#allocation5 + $0x338] sm:$0xf] }
  0x74   :  { %1271 = vmatpush.bf16.msra.mxu0 %v2087_v52  ;;  %v1935_v52 = vor.u32 %v2616_v43, %v1934_v39  ;;  %v2721_v39 = vld [vmem:[#allocation5 + $0x3b8] sm:$0xf0]  ;;  %v2103_v43 = vor.u32 %v2658_v31, %v2102_v30  ;;  %v2282_v30 = vld [vmem:[#allocation5 + $0x320] sm:$0xf]  ;;  %v2703_v31 = vld [vmem:[#allocation5 + $0x328] sm:$0xf0] }
  0x75   :  { %1285 = vmatpush.bf16.msra.mxu1 %v2183_v53  ;;  %v1922_v53 = vld [vmem:[#allocation5 + $0x50] sm:$0xf] }
  0x76   :  { %1312 = vmatpush.bf16.msrb.mxu2 %v2387_v48  ;;  %v2151_v48 = vor.u32 %v2670_v36, %v2150_v35  ;;  %v1923_v63 = vor.u32 %v2613_v57, %v1922_v53  ;;  %v2679_v35 = vld [vmem:[#allocation5 + $0x268] sm:$0xf0]  ;;  %v2628_v36 = vld [vmem:[#allocation5 + $0xd0] sm:$0xf0]  ;;  %v2438_v57 = vld [vmem:[#allocation5 + $0x458] sm:$0xf] }
  0x77   :  { %1299 = vmatpush.bf16.msra.mxu3 %v2279_v58  ;;  %v2222_v58 = vld [vmem:[#allocation5 + $0x2a8] sm:$0xf] }
  0x78   :  { %1272 = vmatpush.bf16.msra.mxu0 %v2075_v6  ;;  %v2610_v6 = vld [vmem:[#allocation5 + $0x40] sm:$0xf0] }
  0x79   :  { %1286 = vmatpush.bf16.msra.mxu1 %v2171_v7  ;;  %v2210_v7 = vld [vmem:[#allocation5 + $0x290] sm:$0xf]  ;;  %v1911_v12 = vor.u32 %v2610_v6, %v1910_v0  ;;  %v2462_v0 = vld [vmem:[#allocation5 + $0x488] sm:$0xf]  ;;  %v2426_v6 = vld [vmem:[#allocation5 + $0x440] sm:$0xf] }
  0x7a   :  { %1313 = vmatpush.bf16.msrb.mxu2 %v2375_v1  ;;  %v2223_v1 = vor.u32 %v2688_v59, %v2222_v58  ;;  %v2742_v58 = vld [vmem:[#allocation5 + $0x460] sm:$0xf0]  ;;  %v2091_v59 = vor.u32 %v2655_v47, %v2090_v46  ;;  %v2752_v46 = vld [vmem:[#allocation8 + $0x18] sm:$0xff]  ;;  %v2751_v47 = vld [vmem:[#allocation8 + $0x10] sm:$0xff] }
  0x7b   :  { %1300 = vmatpush.bf16.msra.mxu3 %v2267_v10  ;;  %1273 = vmatmul.bf16.vlgmr.msra.gmra.mxu0 %v3026_v54  ;;  %v2634_v10 = vld [vmem:[#allocation5 + $0x100] sm:$0xf0] }
  0x7c   :  { %1328 = vmatpush.bf16.msrb.mxu0 %v2459_v18  ;;  %1287 = vmatmul.bf16.vlgmr.msra.gmra.mxu1 %v3034_v20  ;;  %v2007_v18 = vor.u32 %v2634_v10, %v2006_v9 }
  0x7d   :  { %1335 = vmatpush.bf16.msrb.mxu1 %v1971_v11  ;;  %v2127_v11 = vor.u32 %v2664_v4, %v2126_v3  ;;  %v2439_v3 = vor.u32 %v2742_v58, %v2438_v57  ;;  %v2330_v4 = vld [vmem:[#allocation5 + $0x380] sm:$0xf] }
  0x7e   :  { %1314 = vmatpush.bf16.msrb.mxu2 %v2363_v19  ;;  %1301 = vmatmul.bf16.vlgmr.msra.gmra.mxu3 %v3042_v37  ;;  %v2607_v19 = vld [vmem:[#allocation5 + $0x28] sm:$0xf0] }
  0x7f   :  { %1349 = vmatpush.bf16.msrb.mxu3 %v2067_v15  ;;  %v2211_v15 = vor.u32 %v2685_v8, %v2210_v7  ;;  %v2739_v7 = vld [vmem:[#allocation5 + $0x448] sm:$0xf0] }
  0x80   :  { %1363 = vmatpush.bf16.msra.mxu0 %v2163_v34  ;;  %v2186_v34 = vld [vmem:[#allocation5 + $0x260] sm:$0xf] }
  0x81   :  { %1336 = vmatpush.bf16.msrb.mxu1 %v1959_v25  ;;  %1315 = vmatmul.bf16.vlgmr.msrb.gmra.mxu2 %v3044_v42  ;;  %v1886_v25 = vld [vmem:[#allocation5 + $0x8] sm:$0xf]  ;;  %v2187_v45 = vor.u32 %v2679_v35, %v2186_v34  ;;  %v2283_v34 = vor.u32 %v2703_v31, %v2282_v30 }
  0x82   :  { %1377 = vmatpush.bf16.msra.mxu2 %v2259_v27  ;;  %v1899_v27 = vor.u32 %v2607_v19, %v1898_v14  ;;  %v2712_v14 = vld [vmem:[#allocation5 + $0x370] sm:$0xf0]  ;;  %v2402_v19 = vld [vmem:[#allocation5 + $0x410] sm:$0xf] }
  0x83   :  { %1350 = vmatpush.bf16.msrb.mxu3 %v2055_v28  ;;  %v2604_v28 = vld [vmem:[#allocation5 + $0x10] sm:$0xf0]  ;;  %v2403_v23 = vor.u32 %v2733_v21, %v2402_v19 }
  0x84   :  { %1364 = vmatpush.bf16.msra.mxu0 %v2151_v48  ;;  %v1887_v44 = vor.u32 %v2604_v28, %v1886_v25  ;;  %v1983_v48 = vor.u32 %v2628_v36, %v1982_v33  ;;  %v2390_v25 = vld [vmem:[#allocation5 + $0x3f8] sm:$0xf]  ;;  %v2727_v33 = vld [vmem:[#allocation5 + $0x3e8] sm:$0xf0]  ;;  %v2270_v36 = vld [vmem:[#allocation5 + $0x308] sm:$0xf] }
  0x85   :  { %1337 = vmatpush.bf16.msrb.mxu1 %v1947_v38  ;;  %v2354_v38 = vld [vmem:[#allocation5 + $0x3b0] sm:$0xf]  ;;  %v2760_v19 = vld [vmem:[#allocation8 + $0x58] sm:$0xff] }
  0x86   :  { %1378 = vmatpush.bf16.msra.mxu2 %v2247_v40  ;;  %v2450_v40 = vld [vmem:[#allocation5 + $0x470] sm:$0xf]  ;;  %v2355_v49 = vor.u32 %v2721_v39, %v2354_v38  ;;  %v2700_v38 = vld [vmem:[#allocation5 + $0x310] sm:$0xf0]  ;;  %v2366_v39 = vld [vmem:[#allocation5 + $0x3c8] sm:$0xf] }
  0x87   :  { %1351 = vmatpush.bf16.msrb.mxu3 %v2043_v41  ;;  %v2745_v41 = vld [vmem:[#allocation5 + $0x478] sm:$0xf0] }
  0x88   :  { %1365 = vmatpush.bf16.msra.mxu0 %v2139_v62  ;;  %v2451_v53 = vor.u32 %v2745_v41, %v2450_v40  ;;  %v2652_v62 = vld [vmem:[#allocation5 + $0x190] sm:$0xf0]  ;;  %v2754_v41 = vld [vmem:[#allocation8 + $0x28] sm:$0xff] }
  0x89   :  { %1338 = vmatpush.bf16.msrb.mxu1 %v1935_v52  ;;  %v2676_v52 = vld [vmem:[#allocation5 + $0x250] sm:$0xf0]  ;;  %v2079_v8 = vor.u32 %v2652_v62, %v2078_v61 }
  0x8a   :  { %1379 = vmatpush.bf16.msra.mxu2 %v2235_v55  ;;  %v2342_v55 = vld [vmem:[#allocation5 + $0x398] sm:$0xf]  ;;  %v2175_v60 = vor.u32 %v2676_v52, %v2174_v51  ;;  %v2724_v40 = vld [vmem:[#allocation5 + $0x3d0] sm:$0xf0]  ;;  %v2750_v52 = vld [vmem:[#allocation8 + $0x8] sm:$0xff] }
  0x8b   :  { %1352 = vmatpush.bf16.msrb.mxu3 %v2031_v56  ;;  %2465 = vmatmul.msk.bf16.vlgmr.msrb.gmra.mxu0 %vm1135_vm0, %v3038_v50  ;;  %v2718_v56 = vld [vmem:[#allocation5 + $0x3a0] sm:$0xf0]  ;;  %v2764_v62 = vld [vmem:[#allocation8 + $0x78] sm:$0xff] }
  0x8c   :  { %1366 = vmatpush.bf16.msra.mxu0 %v2127_v11  ;;  %v2427_v11 = vor.u32 %v2739_v7, %v2426_v6 }
  0x8d   :  { %1339 = vmatpush.bf16.msrb.mxu1 %v1923_v63  ;;  %v2343_v63 = vor.u32 %v2718_v56, %v2342_v55  ;;  %v2749_v55 = vld [vmem:[#allocation8] sm:$0xff] }
  0x8e   :  { %1380 = vmatpush.bf16.msra.mxu2 %v2223_v1  ;;  %v2748_v1 = vld [vmem:[#allocation5 + $0x490] sm:$0xf0] }
  0x8f   :  { %1353 = vmatpush.bf16.msrb.mxu3 %v2019_v5  ;;  %v2715_v5 = vld [vmem:[#allocation5 + $0x388] sm:$0xf0]  ;;  %v2463_v9 = vor.u32 %v2748_v1, %v2462_v0 }
  0x90   :  { %1367 = vmatpush.bf16.msra.mxu0 %v2115_v26  ;;  %v2331_v10 = vor.u32 %v2715_v5, %v2330_v4  ;;  %v2730_v26 = vld [vmem:[#allocation5 + $0x400] sm:$0xf0]  ;;  %v2763_v5 = vld [vmem:[#allocation8 + $0x70] sm:$0xff] }
  0x91   :  { %1340 = vmatpush.bf16.msrb.mxu1 %v1911_v12  ;;  %v2318_v12 = vld [vmem:[#allocation5 + $0x368] sm:$0xf] }
  0x92   :  { %1381 = vmatpush.bf16.msra.mxu2 %v2211_v15  ;;  %v2414_v15 = vld [vmem:[#allocation5 + $0x428] sm:$0xf]  ;;  %v2319_v17 = vor.u32 %v2712_v14, %v2318_v12 }
  0x93   :  { %1354 = vmatpush.bf16.msrb.mxu3 %v2007_v18  ;;  %v2709_v18 = vld [vmem:[#allocation5 + $0x358] sm:$0xf0] }
  0x94   :  { %1368 = vmatpush.bf16.msra.mxu0 %v2103_v43  ;;  %v2271_v43 = vor.u32 %v2700_v38, %v2270_v36 }
  0x95   :  { %1341 = vmatpush.bf16.msrb.mxu1 %v1899_v27  ;;  %v2756_v27 = vld [vmem:[#allocation8 + $0x38] sm:$0xff] }
  0x96   :  { %1382 = vmatpush.bf16.msra.mxu2 %v2199_v29  ;;  %v2391_v29 = vor.u32 %v2730_v26, %v2390_v25  ;;  %v2758_v26 = vld [vmem:[#allocation8 + $0x48] sm:$0xff] }
  0x97   :  { %1355 = vmatpush.bf16.msrb.mxu3 %v1995_v32  ;;  %v2378_v32 = vld [vmem:[#allocation5 + $0x3e0] sm:$0xf] }
  0x98   :  { %1369 = vmatpush.bf16.msra.mxu0 %v2091_v59  ;;  %v2379_v35 = vor.u32 %v2727_v33, %v2378_v32 }
  0x99   :  { %1342 = vmatpush.bf16.msrb.mxu1 %v1887_v44  ;;  %v2367_v44 = vor.u32 %v2724_v40, %v2366_v39 }
  0x9a   :  { %1383 = vmatpush.bf16.msra.mxu2 %v2187_v45  ;;  %v2753_v45 = vld [vmem:[#allocation8 + $0x20] sm:$0xff] }
  0x9b   :  { %1356 = vmatpush.bf16.msrb.mxu3 %v1983_v48  ;;  %v3064_v48 = vld [vmem:[#allocation7] sm:$0x7] }
  0x9c   :  { %1343 = vmatmul.bf16.vlgmr.msrb.gmra.mxu1 %v3028_v2  ;;  %1370 = vmatpush.bf16.msra.mxu0 %v2079_v8  ;;  %v2415_v2 = vor.u32 %v2736_v16, %v2414_v15  ;;  %v2761_v16 = vld [vmem:[#allocation8 + $0x60] sm:$0xff] }
  0x9d   :  { %1391 = vmatpush.bf16.msra.mxu1 %v2355_v49 }
  0x9e   :  { %1357 = vmatmul.bf16.vlgmr.msrb.gmra.mxu3 %v3032_v13  ;;  %1384 = vmatpush.bf16.msra.mxu2 %v2175_v60  ;;  %v2306_v13 = vld [vmem:[#allocation5 + $0x350] sm:$0xf] }
  0x9f   :  { %1405 = vmatpush.bf16.msra.mxu3 %v2451_v53  ;;  %1371 = vmatmul.bf16.vlgmr.msra.gmra.mxu0 %v3026_v54  ;;  %v2307_v22 = vor.u32 %v2709_v18, %v2306_v13  ;;  %v2755_v54 = vld [vmem:[#allocation8 + $0x30] sm:$0xff] }
  0xa0   :  { %1426 = vmatpush.bf16.msrb.mxu0 %v2463_v9  ;;  %v2762_v9 = vld [vmem:[#allocation8 + $0x68] sm:$0xff] }
  0xa1   :  { %1392 = vmatpush.bf16.msra.mxu1 %v2343_v63  ;;  %1385 = vmatmul.bf16.vlgmr.msra.gmra.mxu2 %v3034_v20  ;;  %v2706_v20 = vld [vmem:[#allocation5 + $0x340] sm:$0xf0] }
  0xa2   :  { %v2295_v28 = vor.u32 %v2706_v20, %v2294_v24  ;;  %1638 = vmatpush.bf16.msrb.mxu2 %v2756_v27  ;;  %v2759_v20 = vld [vmem:[#allocation8 + $0x50] sm:$0xff]  ;;  %v311_v27 = vperm.slane %v3064_v48, 1 }
  0xa3   :  { %1406 = vmatpush.bf16.msra.mxu3 %v2439_v3 }
  0xa4   :  { %1652 = vmatpush.bf16.msra.mxu0 %v2764_v62 }
  0xa5   :  { %1393 = vmatpush.bf16.msra.mxu1 %v2331_v10 }
  0xa6   :  { %1639 = vmatpush.bf16.msrb.mxu2 %v2755_v54 }
  0xa7   :  { %1407 = vmatpush.bf16.msra.mxu3 %v2427_v11 }
  0xa8   :  { %1653 = vmatpush.bf16.msra.mxu0 %v2763_v5  ;;  %v2765_v5 = vld [vmem:[#allocation8 + $0x80] sm:$0xff] }
  0xa9   :  { %1394 = vmatpush.bf16.msra.mxu1 %v2319_v17 }
  0xaa   :  { %1640 = vmatpush.bf16.msrb.mxu2 %v2754_v41 }
  0xab   :  { %1408 = vmatpush.bf16.msra.mxu3 %v2415_v2 }
  0xac   :  { %1654 = vmatpush.bf16.msra.mxu0 %v2762_v9 }
  0xad   :  { %1395 = vmatpush.bf16.msra.mxu1 %v2307_v22 }
  0xae   :  { %1641 = vmatpush.bf16.msrb.mxu2 %v2753_v45 }
  0xaf   :  { %1409 = vmatpush.bf16.msra.mxu3 %v2403_v23  ;;  %2466 = vmatmul.msk.bf16.vlgmr.msrb.gmra.mxu0 %vm1135_vm0, %v3038_v50  ;;  %v310_v50 = vperm.slane %v3064_v48, 0 }
  0xb0   :  { %1655 = vmatpush.bf16.msra.mxu0 %v2761_v16 }
  0xb1   :  { %1396 = vmatpush.bf16.msra.mxu1 %v2295_v28  ;;  %v2757_v28 = vld [vmem:[#allocation8 + $0x40] sm:$0xff] }
  0xb2   :  { %1642 = vmatpush.bf16.msrb.mxu2 %v2752_v46  ;;  %v2772_v46 = vld [vmem:[#allocation8 + $0xb8] sm:$0xff] }
  0xb3   :  { %1410 = vmatpush.bf16.msra.mxu3 %v2391_v29 }
  0xb4   :  { %1656 = vmatpush.bf16.msra.mxu0 %v2760_v19 }
  0xb5   :  { %1397 = vmatpush.bf16.msra.mxu1 %v2283_v34 }
  0xb6   :  { %1643 = vmatpush.bf16.msrb.mxu2 %v2751_v47 }
  0xb7   :  { %1411 = vmatpush.bf16.msra.mxu3 %v2379_v35 }
  0xb8   :  { %v1148_v49 = vpop.f32.mrf.mxu0  ;;  %1657 = vmatpush.bf16.msra.mxu0 %v2759_v20 }
  0xb9   :  { %1398 = vmatpush.bf16.msra.mxu1 %v2271_v43  ;;  %v1162_v53 = vpop.f32.mrf.mxu1 }
  0xba   :  { %1644 = vmatpush.bf16.msrb.mxu2 %v2750_v52  ;;  %v2771_v52 = vld [vmem:[#allocation8 + $0xb0] sm:$0xff] }
  0xbb   :  { %1412 = vmatpush.bf16.msra.mxu3 %v2367_v44 }
  0xbc   :  { %1399 = vmatmul.bf16.vlgmr.msra.gmra.mxu1 %v3042_v37  ;;  %v1149_v37 = vadd.f32 %v1148_v49, %v310_v50  ;;  %1658 = vmatpush.bf16.msra.mxu0 %v2758_v26 }
  0xbd   :  { %1666 = vmatpush.bf16.msrb.mxu1 %v2772_v46 }
  0xbe   :  { %1413 = vmatmul.bf16.vlgmr.msra.gmra.mxu3 %v3044_v42  ;;  %1645 = vmatpush.bf16.msrb.mxu2 %v2749_v55  ;;  %v1163_v57 = vadd.f32 %v1162_v53, %v1149_v37 }
  0xc0   :  { %v1176_v51 = vpop.f32.mrf.mxu2  ;;  %v1150_v56 = vpop.f32.mrf.mxu0  ;;  %1659 = vmatpush.bf16.msra.mxu0 %v2757_v28 }
  0xc1   :  { %v1164_v58 = vpop.f32.mrf.mxu1  ;;  %v1190_v59 = vpop.f32.mrf.mxu3  ;;  %v1177_v60 = vadd.f32 %v1176_v51, %v1163_v57  ;;  %v1151_v61 = vadd.f32 %v1150_v56, %v310_v50  ;;  %1667 = vmatpush.bf16.msrb.mxu1 %v2771_v52 }
  0xc3   :  { %v1165_v63 = vadd.f32 %v1164_v58, %v1151_v61  ;;  %v1191_v0 = vadd.f32 %v1190_v59, %v1177_v60  ;;  %v2770_v58 = vld [vmem:[#allocation8 + $0xa8] sm:$0xff]  ;;  %v2769_v61 = vld [vmem:[#allocation8 + $0xa0] sm:$0xff] }
  0xc5   :  { %1668 = vmatpush.bf16.msrb.mxu1 %v2770_v58 }
  0xc8   :  { %v1178_v42 = vpop.f32.mrf.mxu2 }
  0xc9   :  { %v1179_v6 = vadd.f32 %v1178_v42, %v1165_v63  ;;  %v1192_v8 = vpop.f32.mrf.mxu3  ;;  %1669 = vmatpush.bf16.msrb.mxu1 %v2769_v61  ;;  %v2768_v63 = vld [vmem:[#allocation8 + $0x98] sm:$0xff] }
  0xcb   :  { %v1193_v10 = vadd.f32 %v1192_v8, %v1179_v6 }
  0xcd   :  { %1670 = vmatpush.bf16.msrb.mxu1 %v2768_v63 }
  0xd0   :  { %v1232_v3 = vpop.f32.mrf.mxu2 }
  0xd8   :  { %v1204_v1 = vpop.f32.mrf.mxu0  ;;  %v1234_v17 = vpop.f32.mrf.mxu2 }
  0xd9   :  { %v1218_v4 = vpop.f32.mrf.mxu1  ;;  %v1205_v7 = vadd.f32 %v1204_v1, %v1191_v0  ;;  %v2767_v0 = vld [vmem:[#allocation8 + $0x90] sm:$0xff] }
  0xda   :  { %1671 = vmatpush.bf16.msrb.mxu1 %v2767_v0 }
  0xdb   :  { %v1219_v11 = vadd.f32 %v1218_v4, %v1205_v7  ;;  %v312_v7 = vperm.slane %v3064_v48, 2 }
  0xdd   :  { %v1233_v2 = vadd.f32 %v1232_v3, %v1219_v11  ;;  %v2766_v3 = vld [vmem:[#allocation8 + $0x88] sm:$0xff] }
  0xde   :  { %1672 = vmatpush.bf16.msrb.mxu1 %v2766_v3 }
  0xdf   :  { %v1433_v21 = vmax.f32 %v1233_v2, 0.0 }
  0xe0   :  { %v1206_v12 = vpop.f32.mrf.mxu0 }
  0xe1   :  { %v1207_v14 = vadd.f32 %v1206_v12, %v1193_v10  ;;  %v1220_v15 = vpop.f32.mrf.mxu1  ;;  %v1246_v24 = vpop.f32.mrf.mxu3 }
  0xe2   :  { %v1247_v30 = vadd.f32 %v1246_v24, %v311_v27  ;;  %1673 = vmatpush.bf16.msrb.mxu1 %v2765_v5 }
  0xe3   :  { %v1221_v13 = vadd.f32 %v1220_v15, %v1207_v14 }
  0xe4   :  { %v1260_v25 = vpop.f32.mrf.mxu2 }
  0xe5   :  { %v1235_v18 = vadd.f32 %v1234_v17, %v1221_v13  ;;  %v1261_v32 = vadd.f32 %v1260_v25, %v1247_v30 }
  0xe7   :  { %v1436_v22 = vmax.f32 %v1235_v18, 0.0 }
  0xe9   :  { %v1439_v23 = vpack.c.bf16 %v1436_v22, %v1433_v21  ;;  %v1248_v29 = vpop.f32.mrf.mxu3 }
  0xea   :  { %v1249_v34 = vadd.f32 %v1248_v29, %v311_v27 }
  0xeb   :  { %1646 = vmatmul.bf16.vlgmr.msrb.gmra.mxu2 %v1439_v23 }
  0xec   :  { %v1262_v54 = vpop.f32.mrf.mxu2 }
  0xed   :  { %v1263_v39 = vadd.f32 %v1262_v54, %v1249_v34  ;;  %v2779_v34 = vld [vmem:[#allocation10 + $0x30] sm:$0xff] }
  0xf8   :  { %v1274_v31 = vpop.f32.mrf.mxu0 }
  0xf9   :  { %v1288_v33 = vpop.f32.mrf.mxu1  ;;  %v1275_v35 = vadd.f32 %v1274_v31, %v1261_v32 }
  0xfb   :  { %v1289_v41 = vadd.f32 %v1288_v33, %v1275_v35  ;;  %v2780_v33 = vld [vmem:[#allocation10 + $0x38] sm:$0xff]  ;;  %v2778_v35 = vld [vmem:[#allocation10 + $0x28] sm:$0xff] }
  0xfc   :  { %1751 = vmatpush.bf16.msrb.mxu3 %v2780_v33 }
 0x100   :  { %v1276_v38 = vpop.f32.mrf.mxu0  ;;  %1752 = vmatpush.bf16.msrb.mxu3 %v2779_v34 }
 0x101   :  { %v1302_v36 = vpop.f32.mrf.mxu3  ;;  %v1277_v43 = vadd.f32 %v1276_v38, %v1263_v39  ;;  %v1290_v44 = vpop.f32.mrf.mxu1  ;;  %v2776_v38 = vld [vmem:[#allocation10 + $0x18] sm:$0xff]  ;;  %v2775_v39 = vld [vmem:[#allocation10 + $0x10] sm:$0xff] }
 0x102   :  { %v1303_v45 = vadd.f32 %v1302_v36, %v1289_v41  ;;  %v2777_v36 = vld [vmem:[#allocation10 + $0x20] sm:$0xff] }
 0x103   :  { %v1291_v51 = vadd.f32 %v1290_v44, %v1277_v43  ;;  %v2773_v41 = vld [vmem:[#allocation10] sm:$0xff] }
 0x104   :  { %v1316_v40 = vpop.f32.mrf.mxu2  ;;  %1753 = vmatpush.bf16.msrb.mxu3 %v2778_v35 }
 0x105   :  { %v1317_v53 = vadd.f32 %v1316_v40, %v1303_v45  ;;  %v2774_v40 = vld [vmem:[#allocation10 + $0x8] sm:$0xff] }
 0x106   :  { %v2795_v45 = vld [vmem:[%s3082_s4] ss:$0 sm:$0xff] }
 0x108   :  { %v1330_v49 = vpop.f32.mrf.mxu0  ;;  %1754 = vmatpush.bf16.msrb.mxu3 %v2777_v36 }
 0x109   :  { %v1304_v47 = vpop.f32.mrf.mxu3  ;;  %v1331_v37 = vadd.f32 %v1330_v49, %v1317_v53 }
 0x10a   :  { %v1305_v50 = vadd.f32 %v1304_v47, %v1291_v51 }
 0x10b   :  { %v1434_v59 = vmax.f32 %v1331_v37, 0.0 }
 0x10c   :  { %v1318_v55 = vpop.f32.mrf.mxu2  ;;  %1755 = vmatpush.bf16.msrb.mxu3 %v2776_v38 }
 0x10d   :  { %v1319_v56 = vadd.f32 %v1318_v55, %v1305_v50 }
 0x110   :  { %v1332_v42 = vpop.f32.mrf.mxu0  ;;  %1756 = vmatpush.bf16.msrb.mxu3 %v2775_v39 }
 0x111   :  { %v1333_v57 = vadd.f32 %v1332_v42, %v1319_v56 }
 0x113   :  { %v1437_v60 = vmax.f32 %v1333_v57, 0.0 }
 0x114   :  { %1757 = vmatpush.bf16.msrb.mxu3 %v2774_v40 }
 0x115   :  { %v1440_v62 = vpack.c.bf16 %v1437_v60, %v1434_v59  ;;  %v2796_v59 = vld [vmem:[%s3084_s6] ss:$0 sm:$0xff] }
 0x117   :  { %1660 = vmatmul.bf16.vlgmr.msra.gmra.mxu0 %v1440_v62 }
 0x118   :  { %1758 = vmatpush.bf16.msrb.mxu3 %v2773_v41 }
 0x119   :  { %v1344_v1 = vpop.f32.mrf.mxu1 }
 0x11a   :  { %v1345_v9 = vadd.f32 %v1344_v1, %v312_v7 }
 0x11c   :  { %v1372_v4 = vpop.f32.mrf.mxu0 }
 0x121   :  { %v1358_v6 = vpop.f32.mrf.mxu3  ;;  %v1346_v8 = vpop.f32.mrf.mxu1 }
 0x122   :  { %v1359_v14 = vadd.f32 %v1358_v6, %v1345_v9  ;;  %v1347_v15 = vadd.f32 %v1346_v8, %v312_v7 }
 0x124   :  { %v1374_v10 = vpop.f32.mrf.mxu0  ;;  %v1386_v11 = vpop.f32.mrf.mxu2  ;;  %v1373_v17 = vadd.f32 %v1372_v4, %v1359_v14 }
 0x126   :  { %v1387_v19 = vadd.f32 %v1386_v11, %v1373_v17 }
 0x129   :  { %v1360_v12 = vpop.f32.mrf.mxu3 }
 0x12a   :  { %v1361_v2 = vadd.f32 %v1360_v12, %v1347_v15 }
 0x12c   :  { %v1428_v13 = vpop.f32.mrf.mxu0  ;;  %v1375_v21 = vadd.f32 %v1374_v10, %v1361_v2  ;;  %v1388_v22 = vpop.f32.mrf.mxu2 }
 0x12e   :  { %v1389_v20 = vadd.f32 %v1388_v22, %v1375_v21 }
 0x134   :  { %v1430_v29 = vpop.f32.mrf.mxu0 }
 0x139   :  { %v1400_v16 = vpop.f32.mrf.mxu1 }
 0x13a   :  { %v1401_v23 = vadd.f32 %v1400_v16, %v1387_v19 }
 0x141   :  { %v1414_v18 = vpop.f32.mrf.mxu3  ;;  %v1402_v24 = vpop.f32.mrf.mxu1 }
 0x142   :  { %v1415_v25 = vadd.f32 %v1414_v18, %v1401_v23  ;;  %v1403_v48 = vadd.f32 %v1402_v24, %v1389_v20 }
 0x144   :  { %v1429_v27 = vadd.f32 %v1428_v13, %v1415_v25 }
 0x146   :  { %v1435_v31 = vmax.f32 %v1429_v27, 0.0 }
 0x149   :  { %v1416_v26 = vpop.f32.mrf.mxu3 }
 0x14a   :  { %v1417_v28 = vadd.f32 %v1416_v26, %v1403_v48 }
 0x14c   :  { %v1431_v30 = vadd.f32 %v1430_v29, %v1417_v28 }
 0x14e   :  { %v1438_v54 = vmax.f32 %v1431_v30, 0.0 }
 0x150   :  { %v1441_v32 = vpack.c.bf16 %v1438_v54, %v1435_v31 }
 0x152   :  { %1674 = vmatmul.bf16.vlgmr.msrb.gmra.mxu1 %v1441_v32 }
 0x16e   :  { %v1647_v43 = vpop.f32.mrf.mxu2 }
 0x16f   :  { %v1648_v49 = vadd.f32 %v2795_v45, %v1647_v43 }
 0x176   :  { %v1649_v47 = vpop.f32.mrf.mxu2 }
 0x177   :  { %v1650_v52 = vadd.f32 %v2795_v45, %v1649_v47 }
 0x194   :  { %v1661_v44 = vpop.f32.mrf.mxu0 }
 0x195   :  { %v1662_v53 = vadd.f32 %v1661_v44, %v1648_v49 }
 0x19c   :  { %v1663_v51 = vpop.f32.mrf.mxu0 }
 0x19d   :  { %v1664_v50 = vadd.f32 %v1663_v51, %v1650_v52 }
 0x1cf   :  { %v1675_v46 = vpop.f32.mrf.mxu1 }
 0x1d0   :  { %v1676_v55 = vadd.f32 %v1675_v46, %v1662_v53 }
 0x1d2   :  { %v1680_v42 = vmax.f32 %v1676_v55, 0.0 }
 0x1d7   :  { %v1677_v37 = vpop.f32.mrf.mxu1 }
 0x1d8   :  { %v1678_v56 = vadd.f32 %v1677_v37, %v1664_v50 }
 0x1da   :  { %v1681_v57 = vmax.f32 %v1678_v56, 0.0 }
 0x1dc   :  { %v1682_v58 = vpack.c.bf16 %v1681_v57, %v1680_v42 }
 0x1de   :  { %1759 = vmatmul.bf16.vlgmr.msrb.gmra.mxu3 %v1682_v58 }
 0x261   :  { %v1760_v60 = vpop.f32.mrf.mxu3 }
 0x262   :  { %v1761_v61 = vadd.f32 %v2796_v59, %v1760_v60 }
 0x264   :  { %v1765_v62 = vrot.slane %v1761_v61, 4 }
 0x266   :  { %v1766_v63 = vmax.f32 %v1761_v61, %v1765_v62 }
 0x268   :  { %v1767_v0 = vrot.slane %v1766_v63, 2 }
 0x269   :  { %v1762_v1 = vpop.f32.mrf.mxu3 }
 0x26a   :  { %v1768_v3 = vmax.f32 %v1766_v63, %v1767_v0  ;;  %v1763_v4 = vadd.f32 %v2796_v59, %v1762_v1 }
 0x26c   :  { %v1769_v5 = vrot.slane %v1768_v3, 1  ;;  %v1771_v6 = vrot.slane %v1763_v4, 4 }
 0x26e   :  { %v1770_v7 = vmax.f32 %v1768_v3, %v1769_v5  ;;  %v1772_v8 = vmax.f32 %v1763_v4, %v1771_v6 }
 0x270   :  { %v1777_v9 = vsub.f32 %v1761_v61, %v1770_v7  ;;  %v1773_v10 = vrot.slane %v1772_v8, 2 }
 0x272   :  { %v1779_v11 = vmul.f32 1.442695, %v1777_v9  ;;  %v1774_v12 = vmax.f32 %v1772_v8, %v1773_v10 }
 0x274   :  { %2797 = vpow2.f32 %v1779_v11  ;;  %v1775_v14 = vrot.slane %v1774_v12, 1 }
 0x276   :  { %v1776_v15 = vmax.f32 %v1774_v12, %v1775_v14 }
 0x278   :  { %v1778_v16 = vsub.f32 %v1763_v4, %v1776_v15 }
 0x27a   :  { %v2798_v17 = vpop.eup %2797  ;;  %v1781_v2 = vmul.f32 1.442695, %v1778_v16 }
 0x27b   :  { %v1783_v13 = vrot.slane %v2798_v17, 4 }
 0x27c   :  { %2799 = vpow2.f32 %v1781_v2 }
 0x27d   :  { %v1784_v18 = vadd.f32 %v2798_v17, %v1783_v13 }
 0x27f   :  { %v1785_v19 = vrot.slane %v1784_v18, 2 }
 0x281   :  { %v1786_v21 = vadd.f32 %v1785_v19, %v1784_v18 }
 0x282   :  { %v2800_v22 = vpop.eup %2799 }
 0x283   :  { %v1787_v23 = vrot.slane %v1786_v21, 1  ;;  %v1789_v24 = vrot.slane %v2800_v22, 4 }
 0x285   :  { %v1788_v20 = vadd.f32 %v1787_v23, %v1786_v21  ;;  %v1790_v25 = vadd.f32 %v2800_v22, %v1789_v24 }
 0x287   :  { %2801 = vrcp.f32 %v1788_v20  ;;  %v1791_v48 = vrot.slane %v1790_v25, 2  ;;  %v1806_v54 = vand.u32 2147483648, %v1788_v20  ;;  %v1804_v33 = vand.u32 2147483647, %v1788_v20 }
 0x288   :  { %vm1800_vm2 = vweird.f32 %v1788_v20 }
 0x289   :  { %v1792_v26 = vadd.f32 %v1791_v48, %v1790_v25  ;;  %v1807_v35 = vor.u32 1.1754944e-38, %v1806_v54  ;;  %vm1805_vm4 = vcmp.eq.f32.partialorder %v1804_v33, 8.507059e+37 }
 0x28b   :  { %v1793_v27 = vrot.slane %v1792_v26, 1 }
 0x28d   :  { %v2802_v28 = vpop.eup %2801  ;;  %v1794_v30 = vadd.f32 %v1793_v27, %v1792_v26 }
 0x28e   :  { %v1796_v29 = vmul.f32 %v2802_v28, %v1788_v20  ;;  %vm1801_vm1 = vweird.f32 %v2802_v28 }
 0x28f   :  { %2803 = vrcp.f32 %v1794_v30  ;;  %vm1802_vm3 = vmor %vm1800_vm2, %vm1801_vm1  ;;  %v1820_v44 = vand.u32 2147483648, %v1794_v30  ;;  %v1818_v46 = vand.u32 2147483647, %v1794_v30  ;;  %vm1814_vm6 = vweird.f32 %v1794_v30 }
 0x290   :  { %v1797_v31 = vsub.f32 1.0, %v1796_v29 }
 0x291   :  { %v1821_v49 = vor.u32 1.1754944e-38, %v1820_v44  ;;  %vm1819_vm8 = vcmp.eq.f32.partialorder %v1818_v46, 8.507059e+37 }
 0x292   :  { %v1798_v32 = vmul.f32 %v2802_v28, %v1797_v31 }
 0x294   :  { %v1799_v34 = vadd.f32 %v2802_v28, %v1798_v32 }
 0x295   :  { %v2804_v36 = vpop.eup %2803 }
 0x296   :  { %v1803_v38 = vsel %vm1802_vm3, %v2802_v28, %v1799_v34  ;;  %v1810_v40 = vmul.f32 %v2804_v36, %v1794_v30  ;;  %vm1815_vm5 = vweird.f32 %v2804_v36 }
 0x297   :  { %v1808_v39 = vsel %vm1805_vm4, %v1807_v35, %v1803_v38  ;;  %vm1816_vm7 = vmor %vm1814_vm6, %vm1815_vm5 }
 0x298   :  { %v1823_v41 = vmul.f32 %v2798_v17, %v1808_v39  ;;  %v1811_v43 = vsub.f32 1.0, %v1810_v40 }
 0x29a   :  { %1825 = vst [vmem:[#allocation11] sm:$0xff] %v1823_v41  ;;  %v1812_v45 = vmul.f32 %v2804_v36, %v1811_v43 }
 0x29c   :  { %v1813_v47 = vadd.f32 %v2804_v36, %v1812_v45 }
 0x29e   :  { %v1817_v51 = vsel %vm1816_vm7, %v2804_v36, %v1813_v47 }
 0x29f   :  { %v1822_v52 = vsel %vm1819_vm8, %v1821_v49, %v1817_v51 }
 0x2a0   :  { %v1824_v53 = vmul.f32 %v2800_v22, %v1822_v52 }
 0x2a2   :  { %1826 = vst [vmem:[#allocation11 + $0x8] sm:$0xff] %v1824_v53 }
 0x2a3   :  { %1830 = vsyncadd [#allocation4], 128  ;;  %s1833_s8 = sshll.u32 %s3085_s7, 4  ;;  %s2968_s9 = smov [#allocation11]   ;;  %s1834_s8 = int_to_ptr.hbm [resolvable:$true] %s1833_s8 }
 0x2a4   :  { %s1831_s10 = sshll.u32 %s2968_s9, 4  ;;  %s2969_s11 = smov 128   ;;  %s1832_s10 = int_to_ptr.vmem [resolvable:$true] %s1831_s10 }
 0x2a5   :  { %s2970_s12 = smov 8  }
 0x2a6   :  { %1839 = dma.vmem_to_hbm [thread:$0]  %s1832_s10, 128, %s1834_s8, [#allocation4], %s2969_s11, %s2969_s11, %s2970_s12  }
 0x2a7   :  { %2955 = dma.done.wait [#allocation4], 256  }
 0x2a8   :  { %2956 = vsyncadd [#allocation4], 4294967040 }
 0x2a9   :  { %1844 = vsyncpa [#allocation3], 1 }
 0x2aa   :  { %1845 = vsyncpa [#allocation6], 1 }
 0x2ab   :  { %1846 = vsyncpa [#allocation9], 1 }
 0x2ac   :  { %1847 = vsyncpa [#allocation4], 1 }

</bundles_post_ra>
